<compile_context>
chip_gen: v7x
topology: tpu7x:2x2x1
jax: 0.10.0
libtpu: 0.0.40
codegen_flags: <defaults>
</compile_context>

<pallas_src>
import numpy as np
import jax
import jax.numpy as jnp
from jax import lax
from jax.experimental import pallas as pl
from jax.experimental.pallas import tpu as pltpu


# ----------------------------- Pallas kernel ------------------------------ #

def _sigmoid(x):
    # Exact sigmoid via tanh (EUP transcendental) -> no f32 VALU divide chain.
    return 0.5 * jnp.tanh(0.5 * x) + 0.5


def set_mlp_kernel(x_ref, w1_ref, w2_ref, w3_ref, w4_ref, bias_ref, out_ref):
    # x_ref block: (tb, S*Nr*Nc) bf16 — tb whole sets, one set per row.
    h1w = w1_ref.shape[1]          # S * 3*dim_hidden
    h2w = w2_ref.shape[1]          # S * dim_hidden
    h3w = w3_ref.shape[1]          # S * 3*dim_hidden
    dow = w4_ref.shape[1]          # 128 (dim_output zero-padded)

    b1 = bias_ref[0:1, 0:h1w]
    b2 = bias_ref[1:2, 0:h2w]
    b3 = bias_ref[2:3, 0:h3w]
    b4 = bias_ref[3:4, 0:dow]

    bf16, f32 = jnp.bfloat16, jnp.float32

    x = x_ref[...]
    # Folded (conv+BN) @ enc Linear 1, block-diagonal over the set dimension.
    h = _sigmoid(jnp.dot(x, w1_ref[...], preferred_element_type=f32) + b1)
    # enc Linear 2 (block-diagonal).
    h = _sigmoid(jnp.dot(h.astype(bf16), w2_ref[...], preferred_element_type=f32) + b2)
    # dec Linear 1 (block-diagonal).
    h = _sigmoid(jnp.dot(h.astype(bf16), w3_ref[...], preferred_element_type=f32) + b3)
    # dec Linear 2: W4s = vstack(S copies of w4/S) -> also performs the set mean.
    h = jnp.dot(h.astype(bf16), w4_ref[...], preferred_element_type=f32) + b4
    out_ref[...] = _sigmoid(h)                                   # (tb, 128) f32


def set_mlp_forward(x_rows, params, *, dim_output, block_batch=512):
    """x_rows: (B, set_size*Nr*Nc) float -> (B, dim_output) float32."""
    w1, w2, w3, w4, bias_pack = params
    B, K1 = x_rows.shape
    H1, H2, D_pad = w1.shape[1], w2.shape[1], w4.shape[1]

    # Sets (rows) per grid step: multiple of 8; when one step would cover the
    # whole batch, split in two so v7x's second TensorCore gets work.
    tb = min(block_batch, B)
    if B > 8 and tb >= B:
        tb = -(-B // 2)
    tb = max(8, ((tb + 7) // 8) * 8)
    n_blocks = pl.cdiv(B, tb)
    B_pad = n_blocks * tb

    x_rows = x_rows.astype(jnp.bfloat16)
    if B_pad != B:
        x_rows = jnp.pad(x_rows, ((0, B_pad - B), (0, 0)))

    cost = pl.CostEstimate(
        flops=2 * B_pad * (K1 * H1 + H1 * H2 + H2 * H1 + H1 * D_pad),
        transcendentals=B_pad * (H1 + H2 + H1 + D_pad),
        bytes_accessed=int(x_rows.size * 2
                           + (w1.size + w2.size + w3.size + w4.size) * 2
                           + bias_pack.size * 4 + B_pad * D_pad * 4),
    )

    def const(arr):
        return pl.BlockSpec(arr.shape, lambda i: (0, 0))

    out = pl.pallas_call(
        set_mlp_kernel,
        out_shape=jax.ShapeDtypeStruct((B_pad, D_pad), jnp.float32),
        grid=(n_blocks,),
        in_specs=[
            pl.BlockSpec((tb, K1), lambda i: (i, 0)),   # x row slab
            const(w1), const(w2), const(w3), const(w4), # block-diag weights
            const(bias_pack),                           # packed biases
        ],
        out_specs=pl.BlockSpec((tb, D_pad), lambda i: (i, 0)),
        compiler_params=pltpu.CompilerParams(dimension_semantics=("parallel",)),
        cost_estimate=cost,
    )(x_rows, w1, w2, w3, w4, bias_pack)

    return out[:B, :dim_output]


# ------------------------ parameter construction -------------------------- #

def fold_conv_bn(conv_w, conv_b, gamma, beta, rmean, rvar, *,
                 Ch, ks, st, Nr, Nc, rNr, rNc, eps=1e-5):
    """(Nr*Nc, Ch*rNr*rNc) matrix + bias equivalent to Conv2d(1,Ch)+BN(eval)."""
    conv_w = np.asarray(conv_w); conv_b = np.asarray(conv_b)
    gamma = np.asarray(gamma); beta = np.asarray(beta)
    rmean = np.asarray(rmean); rvar = np.asarray(rvar)

    F = Ch * rNr * rNc
    W = np.zeros((Nr * Nc, F), np.float32)
    b = np.zeros((F,), np.float32)
    for c in range(Ch):
        for i in range(rNr):
            for j in range(rNc):
                f = c * rNr * rNc + i * rNc + j          # channel-major flatten
                b[f] = conv_b[c]
                for p in range(ks):
                    for q in range(ks):
                        row = (i * st + p) * Nc + (j * st + q)
                        W[row, f] += conv_w[c, 0, p, q]
    scale = gamma / np.sqrt(rvar + eps)                  # per channel
    scale_f = np.repeat(scale, rNr * rNc)                # per feature column
    shift_f = np.repeat(beta - rmean * scale, rNr * rNc)
    return W * scale_f[None, :], b * scale_f + shift_f


def _block_diag(W, n):
    K, N = W.shape
    out = np.zeros((n * K, n * N), np.float32)
    for s in range(n):
        out[s * K:(s + 1) * K, s * N:(s + 1) * N] = W
    return out


def init_params(key, *, Ch, ks, st, Nr, Nc, rNr, rNc, set_size, dim_hidden,
                dim_output, d_pad=128):
    F = Ch * rNr * rNc
    keys = jax.random.split(key, 14)
    n = lambda k, s: (0.1 * jax.random.normal(k, s)).astype(jnp.float32)

    conv_w = n(keys[0], (Ch, 1, ks, ks))
    conv_b = n(keys[1], (Ch,))
    gamma = 1.0 + n(keys[2], (Ch,))
    beta = n(keys[3], (Ch,))
    rmean = n(keys[4], (Ch,))
    rvar = 1.0 + jnp.abs(n(keys[5], (Ch,)))

    # Linear weights stored as (in, out) (PyTorch stores (out, in)).
    w1 = n(keys[6], (F, 3 * dim_hidden));           b1 = n(keys[7], (3 * dim_hidden,))
    w2 = n(keys[8], (3 * dim_hidden, dim_hidden));  b2 = n(keys[9], (dim_hidden,))
    w3 = n(keys[10], (dim_hidden, 3 * dim_hidden)); b3 = n(keys[11], (3 * dim_hidden,))
    w4 = n(keys[12], (3 * dim_hidden, dim_output)); b4 = n(keys[13], (dim_output,))

    raw = (conv_w, conv_b, gamma, beta, rmean, rvar,
           w1, b1, w2, b2, w3, b3, w4, b4)

    # ---------------- host-side folding (exact algebra) ---------------- #
    wc, bc = fold_conv_bn(conv_w, conv_b, gamma, beta, rmean, rvar,
                          Ch=Ch, ks=ks, st=st, Nr=Nr, Nc=Nc, rNr=rNr, rNc=rNc)
    w1n, b1n = np.asarray(w1), np.asarray(b1)
    w2n, b2n = np.asarray(w2), np.asarray(b2)
    w3n, b3n = np.asarray(w3), np.asarray(b3)
    w4n, b4n = np.asarray(w4), np.asarray(b4)

    # Conv+BN folded into enc Linear 1 (no nonlinearity between them).
    W01 = wc @ w1n                                  # (Nr*Nc, 3*dh)
    b01 = bc @ w1n + b1n                            # (3*dh,)

    S = set_size
    Wbd1 = _block_diag(W01, S)                      # (S*Nr*Nc, S*3dh)
    Wbd2 = _block_diag(w2n, S)                      # (S*3dh,   S*dh)
    Wbd3 = _block_diag(w3n, S)                      # (S*dh,    S*3dh)

    # Last Linear: pad output cols to a 128-lane slab, fold 1/S (set mean) in,
    # stack S copies so the matmul itself performs the set reduction.
    w4p = np.zeros((w4n.shape[0], d_pad), np.float32)
    w4p[:, :dim_output] = w4n / S
    W4s = np.concatenate([w4p] * S, axis=0)         # (S*3dh, 128)

    wmax = max(Wbd1.shape[1], Wbd2.shape[1], Wbd3.shape[1], d_pad)

    def pad_row(v):
        v = np.asarray(v, np.float32).reshape(-1)
        return np.pad(v, (0, wmax - v.size))

    b4p = np.zeros((d_pad,), np.float32)
    b4p[:dim_output] = b4n
    bias_pack = np.stack([pad_row(np.tile(b01, S)),
                          pad_row(np.tile(b2n, S)),
                          pad_row(np.tile(b3n, S)),
                          pad_row(b4p)])            # (4, S*3dh)

    folded = (jnp.asarray(Wbd1, jnp.bfloat16),
              jnp.asarray(Wbd2, jnp.bfloat16),
              jnp.asarray(Wbd3, jnp.bfloat16),
              jnp.asarray(W4s, jnp.bfloat16),
              jnp.asarray(bias_pack, jnp.float32))
    return raw, folded


# ------------------------- pure-JAX reference ----------------------------- #

def reference_forward(x4d, raw, *, Ch, ks, st, set_size, Nr, Nc, rNr, rNc,
                      eps=1e-5):
    """x4d: (B, set_size, Nr, Nc). Mirrors the PyTorch forward (eval-mode BN)."""
    (conv_w, conv_b, gamma, beta, rmean, rvar,
     w1, b1, w2, b2, w3, b3, w4, b4) = raw
    B = x4d.shape[0]
    xin = x4d.reshape(-1, 1, Nr, Nc)
    y = lax.conv_general_dilated(xin, conv_w, (st, st), 'VALID',
                                 dimension_numbers=('NCHW', 'OIHW', 'NCHW'))
    y = y + conv_b[None, :, None, None]
    y = (y - rmean[None, :, None, None]) / jnp.sqrt(rvar[None, :, None, None] + eps)
    y = y * gamma[None, :, None, None] + beta[None, :, None, None]
    y = y.reshape(B, set_size, Ch * rNr * rNc)
    sig = jax.nn.sigmoid
    y = sig(y @ w1 + b1)
    y = sig(y @ w2 + b2)
    y = sig(y @ w3 + b3)
    y = y @ w4 + b4
    return sig(jnp.mean(y, axis=1))


# --------------------------------- main ------------------------------------ #

if __name__ == "__main__":
    # Module hyper-params (Nr = Nc = 4 fixed by the module).
    set_size, channel, dim_output = 8, 4, 16
    kersize, stride, dim_hidden, Nt = 2, 2, 32, 1
    Nr = Nc = 4
    rNr = int((Nr - kersize) / stride + 1)
    rNc = int((Nc - kersize) / stride + 1)

    key = jax.random.PRNGKey(0)
    kx, kp = jax.random.split(key)

    B = 2
    x4d = jax.random.normal(kx, (B, set_size, Nr, Nc), dtype=jnp.float32)

    raw, folded = init_params(kp, Ch=channel, ks=kersize, st=stride,
                              Nr=Nr, Nc=Nc, rNr=rNr, rNc=rNc,
                              set_size=set_size, dim_hidden=dim_hidden,
                              dim_output=dim_output)

    # One set per row: (B, set_size * Nr * Nc) = (B, 128) lane-dense slab.
    x_rows = x4d.reshape(B, set_size * Nr * Nc)

    out = set_mlp_forward(x_rows, folded, dim_output=dim_output)
    out = jax.block_until_ready(out)

    ref = reference_forward(x4d, raw, Ch=channel, ks=kersize, st=stride,
                            set_size=set_size, Nr=Nr, Nc=Nc, rNr=rNr, rNc=rNc)
    ref = jax.block_until_ready(ref)

    assert out.shape == (B, dim_output)
    # bf16 MXU operands (f32 accumulation) vs pure-f32 reference -> ~1e-2 tol.
    assert jnp.allclose(out, ref, rtol=2e-2, atol=1e-2), (out, ref)
    print("KERNEL_OK")
</pallas_src>

<mosaic_0001>
module attributes {stable_mosaic.version = 11 : i64} {
  func.func @set_mlp_kernel(%arg0: i32, %arg1: memref<8x128xbf16, #tpu.memory_space<vmem>>, %arg2: memref<128x768xbf16, #tpu.memory_space<vmem>>, %arg3: memref<768x256xbf16, #tpu.memory_space<vmem>>, %arg4: memref<256x768xbf16, #tpu.memory_space<vmem>>, %arg5: memref<768x128xbf16, #tpu.memory_space<vmem>>, %arg6: memref<4x768xf32, #tpu.memory_space<vmem>>, %arg7: memref<8x128xf32, #tpu.memory_space<vmem>>) attributes {dimension_semantics = [#tpu.dimension_semantics<parallel>], iteration_bounds = array<i64: 1>, scalar_prefetch = 0 : i64, scratch_operands = 0 : i64, tpu.core_type = #tpu.core_type<tc>, window_params = [{transform_indices = @transform_0, window_bounds = array<i64: 8, 128>}, {pipeline_mode = #tpu.pipeline_mode<synchronous>, transform_indices = @transform_1, window_bounds = array<i64: 128, 768>}, {pipeline_mode = #tpu.pipeline_mode<synchronous>, transform_indices = @transform_2, window_bounds = array<i64: 768, 256>}, {pipeline_mode = #tpu.pipeline_mode<synchronous>, transform_indices = @transform_3, window_bounds = array<i64: 256, 768>}, {pipeline_mode = #tpu.pipeline_mode<synchronous>, transform_indices = @transform_4, window_bounds = array<i64: 768, 128>}, {pipeline_mode = #tpu.pipeline_mode<synchronous>, transform_indices = @transform_5, window_bounds = array<i64: 4, 768>}, {transform_indices = @transform_6, window_bounds = array<i64: 8, 128>}]} {
    %c0 = arith.constant 0 : index
    %c0_0 = arith.constant 0 : index
    %0 = vector.load %arg6[%c0, %c0_0] : memref<4x768xf32, #tpu.memory_space<vmem>>, vector<1x768xf32>
    %c1 = arith.constant 1 : index
    %c0_1 = arith.constant 0 : index
    %1 = vector.load %arg6[%c1, %c0_1] : memref<4x768xf32, #tpu.memory_space<vmem>>, vector<1x256xf32>
    %c2 = arith.constant 2 : index
    %c0_2 = arith.constant 0 : index
    %2 = vector.load %arg6[%c2, %c0_2] : memref<4x768xf32, #tpu.memory_space<vmem>>, vector<1x768xf32>
    %c3 = arith.constant 3 : index
    %c0_3 = arith.constant 0 : index
    %3 = vector.load %arg6[%c3, %c0_3] : memref<4x768xf32, #tpu.memory_space<vmem>>, vector<1x128xf32>
    %c0_4 = arith.constant 0 : index
    %c0_5 = arith.constant 0 : index
    %4 = vector.load %arg1[%c0_4, %c0_5] : memref<8x128xbf16, #tpu.memory_space<vmem>>, vector<8x128xbf16>
    %c0_6 = arith.constant 0 : index
    %c0_7 = arith.constant 0 : index
    %5 = vector.load %arg2[%c0_6, %c0_7] : memref<128x768xbf16, #tpu.memory_space<vmem>>, vector<128x768xbf16>
    %cst = arith.constant dense<0.000000e+00> : vector<8x768xf32>
    %6 = tpu.matmul %4, %5, %cst {dimension_numbers = #tpu.dot_dimension_numbers<[1], [0], [0], [1], [0, 0, 1, 1], [], []>} : vector<8x128xbf16>, vector<128x768xbf16>, vector<8x768xf32> -> vector<8x768xf32>
    %7 = vector.broadcast %0 : vector<1x768xf32> to vector<8x768xf32>
    %8 = arith.addf %6, %7 : vector<8x768xf32>
    %cst_8 = arith.constant 5.000000e-01 : f32
    %9 = vector.broadcast %cst_8 : f32 to vector<8x768xf32>
    %10 = arith.mulf %9, %8 : vector<8x768xf32>
    %11 = math.tanh %10 : vector<8x768xf32>
    %cst_9 = arith.constant 5.000000e-01 : f32
    %12 = vector.broadcast %cst_9 : f32 to vector<8x768xf32>
    %13 = arith.mulf %12, %11 : vector<8x768xf32>
    %cst_10 = arith.constant 5.000000e-01 : f32
    %14 = vector.broadcast %cst_10 : f32 to vector<8x768xf32>
    %15 = arith.addf %13, %14 : vector<8x768xf32>
    %16 = arith.truncf %15 : vector<8x768xf32> to vector<8x768xbf16>
    %c0_11 = arith.constant 0 : index
    %c0_12 = arith.constant 0 : index
    %17 = vector.load %arg3[%c0_11, %c0_12] : memref<768x256xbf16, #tpu.memory_space<vmem>>, vector<768x256xbf16>
    %cst_13 = arith.constant dense<0.000000e+00> : vector<8x256xf32>
    %18 = tpu.matmul %16, %17, %cst_13 {dimension_numbers = #tpu.dot_dimension_numbers<[1], [0], [0], [1], [0, 0, 1, 1], [], []>} : vector<8x768xbf16>, vector<768x256xbf16>, vector<8x256xf32> -> vector<8x256xf32>
    %19 = vector.broadcast %1 : vector<1x256xf32> to vector<8x256xf32>
    %20 = arith.addf %18, %19 : vector<8x256xf32>
    %cst_14 = arith.constant 5.000000e-01 : f32
    %21 = vector.broadcast %cst_14 : f32 to vector<8x256xf32>
    %22 = arith.mulf %21, %20 : vector<8x256xf32>
    %23 = math.tanh %22 : vector<8x256xf32>
    %cst_15 = arith.constant 5.000000e-01 : f32
    %24 = vector.broadcast %cst_15 : f32 to vector<8x256xf32>
    %25 = arith.mulf %24, %23 : vector<8x256xf32>
    %cst_16 = arith.constant 5.000000e-01 : f32
    %26 = vector.broadcast %cst_16 : f32 to vector<8x256xf32>
    %27 = arith.addf %25, %26 : vector<8x256xf32>
    %28 = arith.truncf %27 : vector<8x256xf32> to vector<8x256xbf16>
    %c0_17 = arith.constant 0 : index
    %c0_18 = arith.constant 0 : index
    %29 = vector.load %arg4[%c0_17, %c0_18] : memref<256x768xbf16, #tpu.memory_space<vmem>>, vector<256x768xbf16>
    %cst_19 = arith.constant dense<0.000000e+00> : vector<8x768xf32>
    %30 = tpu.matmul %28, %29, %cst_19 {dimension_numbers = #tpu.dot_dimension_numbers<[1], [0], [0], [1], [0, 0, 1, 1], [], []>} : vector<8x256xbf16>, vector<256x768xbf16>, vector<8x768xf32> -> vector<8x768xf32>
    %31 = vector.broadcast %2 : vector<1x768xf32> to vector<8x768xf32>
    %32 = arith.addf %30, %31 : vector<8x768xf32>
    %cst_20 = arith.constant 5.000000e-01 : f32
    %33 = vector.broadcast %cst_20 : f32 to vector<8x768xf32>
    %34 = arith.mulf %33, %32 : vector<8x768xf32>
    %35 = math.tanh %34 : vector<8x768xf32>
    %cst_21 = arith.constant 5.000000e-01 : f32
    %36 = vector.broadcast %cst_21 : f32 to vector<8x768xf32>
    %37 = arith.mulf %36, %35 : vector<8x768xf32>
    %cst_22 = arith.constant 5.000000e-01 : f32
    %38 = vector.broadcast %cst_22 : f32 to vector<8x768xf32>
    %39 = arith.addf %37, %38 : vector<8x768xf32>
    %40 = arith.truncf %39 : vector<8x768xf32> to vector<8x768xbf16>
    %c0_23 = arith.constant 0 : index
    %c0_24 = arith.constant 0 : index
    %41 = vector.load %arg5[%c0_23, %c0_24] : memref<768x128xbf16, #tpu.memory_space<vmem>>, vector<768x128xbf16>
    %cst_25 = arith.constant dense<0.000000e+00> : vector<8x128xf32>
    %42 = tpu.matmul %40, %41, %cst_25 {dimension_numbers = #tpu.dot_dimension_numbers<[1], [0], [0], [1], [0, 0, 1, 1], [], []>} : vector<8x768xbf16>, vector<768x128xbf16>, vector<8x128xf32> -> vector<8x128xf32>
    %43 = vector.broadcast %3 : vector<1x128xf32> to vector<8x128xf32>
    %44 = arith.addf %42, %43 : vector<8x128xf32>
    %cst_26 = arith.constant 5.000000e-01 : f32
    %45 = vector.broadcast %cst_26 : f32 to vector<8x128xf32>
    %46 = arith.mulf %45, %44 : vector<8x128xf32>
    %47 = math.tanh %46 : vector<8x128xf32>
    %cst_27 = arith.constant 5.000000e-01 : f32
    %48 = vector.broadcast %cst_27 : f32 to vector<8x128xf32>
    %49 = arith.mulf %48, %47 : vector<8x128xf32>
    %cst_28 = arith.constant 5.000000e-01 : f32
    %50 = vector.broadcast %cst_28 : f32 to vector<8x128xf32>
    %51 = arith.addf %49, %50 : vector<8x128xf32>
    %c0_29 = arith.constant 0 : index
    %c0_30 = arith.constant 0 : index
    %52 = vector.load %arg7[%c0_29, %c0_30] : memref<8x128xf32, #tpu.memory_space<vmem>>, vector<8x128xf32>
    tpu.vector_store %arg7[%c0_29, %c0_30], %51 {strides = array<i32>} : memref<8x128xf32, #tpu.memory_space<vmem>>, vector<8x128xf32>,
    return
  }
  func.func @transform_0(%arg0: i32) -> (i32, i32) {
    %c0_i32 = arith.constant 0 : i32
    %c0_i32_0 = arith.constant 0 : i32
    return %arg0, %c0_i32 : i32, i32
  }
  func.func @transform_1(%arg0: i32) -> (i32, i32) {
    %c0_i32 = arith.constant 0 : i32
    %c0_i32_0 = arith.constant 0 : i32
    %c0_i32_1 = arith.constant 0 : i32
    return %c0_i32, %c0_i32_0 : i32, i32
  }
  func.func @transform_2(%arg0: i32) -> (i32, i32) {
    %c0_i32 = arith.constant 0 : i32
    %c0_i32_0 = arith.constant 0 : i32
    %c0_i32_1 = arith.constant 0 : i32
    return %c0_i32, %c0_i32_0 : i32, i32
  }
  func.func @transform_3(%arg0: i32) -> (i32, i32) {
    %c0_i32 = arith.constant 0 : i32
    %c0_i32_0 = arith.constant 0 : i32
    %c0_i32_1 = arith.constant 0 : i32
    return %c0_i32, %c0_i32_0 : i32, i32
  }
  func.func @transform_4(%arg0: i32) -> (i32, i32) {
    %c0_i32 = arith.constant 0 : i32
    %c0_i32_0 = arith.constant 0 : i32
    %c0_i32_1 = arith.constant 0 : i32
    return %c0_i32, %c0_i32_0 : i32, i32
  }
  func.func @transform_5(%arg0: i32) -> (i32, i32) {
    %c0_i32 = arith.constant 0 : i32
    %c0_i32_0 = arith.constant 0 : i32
    %c0_i32_1 = arith.constant 0 : i32
    return %c0_i32, %c0_i32_0 : i32, i32
  }
  func.func @transform_6(%arg0: i32) -> (i32, i32) {
    %c0_i32 = arith.constant 0 : i32
    %c0_i32_0 = arith.constant 0 : i32
    return %arg0, %c0_i32 : i32, i32
  }
}

</mosaic_0001>

<bundles_post_ra>
// kernel: tpu_custom_call.1
= control target key start
LH: loop header
LB: loop body
LE: loop exit
PB: predicated region body
PF: predicated region fallthrough
CT: control target
= control target key end

     0   :  { %11 = vsyncpa [#allocation3], 0  ;;  %s3781_s0 = inlined_call_operand.hbm [shape: bf16[8,128], index: 0, kind: input, shape index: {}]   ;;  %s3782_s1 = inlined_call_operand.hbm [shape: bf16[128,768], index: 1, kind: input, shape index: {}]   ;;  %s3783_s2 = inlined_call_operand.hbm [shape: bf16[768,256], index: 2, kind: input, shape index: {}]   ;;  %s3784_s3 = inlined_call_operand.hbm [shape: bf16[256,768], index: 3, kind: input, shape index: {}]   ;;  %s3785_s4 = inlined_call_operand.hbm [shape: bf16[768,128], index: 4, kind: input, shape index: {}]   ;;  %s3786_s5 = inlined_call_operand.hbm [shape: f32[4,768], index: 5, kind: input, shape index: {}]   ;;  %s3787_s6 = inlined_call_operand.hbm [shape: f32[8,128], index: 6, kind: output, shape index: {}]  }
   0x1   :  { %12 = vsyncpa [#allocation6], 0 }
   0x2   :  { %13 = vsyncpa [#allocation9], 0 }
   0x3   :  { %14 = vsyncpa [#allocation12], 0 }
   0x4   :  { %15 = vsyncpa [#allocation4], 0  ;;  %s3574_s21 = smov [#allocation5]   ;;  %s3410_s25 = scalar_lea.hbm %s3782_s1, 6144 }
   0x5   :  { %s31_s22 = sshll.u32 %s3574_s21, 4  ;;  %p3411_p0 = scmp.ne.s32.totalorder %s3782_s1, %s3410_s25  ;;  %s32_s22 = int_to_ptr.vmem [resolvable:$true] %s31_s22 }
   0x6   :  { %p3414_p1 = scmp.lt.u32.totalorder %s3410_s25, %s3782_s1 }
   0x8   :  { %p3416_p2 = pnand %p3414_p1, %p3411_p0 }
   0xa   :  { %3419 = shalt.err (!%p3416_p2)
}
   0xb   :  { %s3420_s30 = scalar_lea.vmem %s32_s22, 6144  ;;  %p3425_p4 = scmp.lt.s32.totalorder %s32_s22, %s32_s22 }
   0xc   :  { %p3421_p3 = scmp.ne.s32.totalorder %s32_s22, %s3420_s30  ;;  %p3426_p5 = scmp.lt.s32.totalorder %s3420_s30, %s3420_s30 }
   0xe   :  { %p3427_p6 = por %p3426_p5, %p3425_p4 }
  0x10   :  { %p3428_p7 = pnand %p3427_p6, %p3421_p3 }
  0x12   :  { %3431 = shalt.err (!%p3428_p7)
}
  0x13   :  { %s3575_s7 = smov 384   ;;  %s3576_s8 = smov 24  }
  0x14   :  { %37 = dma.hbm_to_vmem [thread:$0]  %s3782_s1, 6144, %s32_s22, [#allocation6], %s3575_s7, %s3575_s7, %s3576_s8  }
  0x15   :  { %s3577_s11 = smov [#allocation8]   ;;  %s3578_s13 = smov [#allocation2]  }
  0x16   :  { %s55_s12 = sshll.u32 %s3577_s11, 4  ;;  %s22_s14 = sshll.u32 %s3578_s13, 4  ;;  %s56_s12 = int_to_ptr.vmem [resolvable:$true] %s55_s12  ;;  %s23_s14 = int_to_ptr.vmem [resolvable:$true] %s22_s14 }
  0x17   :  { %s3432_s17 = scalar_lea.hbm %s3784_s3, 12288 }
  0x18   :  { %p3433_p8 = scmp.ne.s32.totalorder %s3784_s3, %s3432_s17  ;;  %p3436_p9 = scmp.lt.u32.totalorder %s3432_s17, %s3784_s3 }
  0x1a   :  { %p3438_p10 = pnand %p3436_p9, %p3433_p8 }
  0x1c   :  { %3441 = shalt.err (!%p3438_p10)
}
  0x1d   :  { %s3442_s1 = scalar_lea.vmem %s56_s12, 12288  ;;  %p3447_p12 = scmp.lt.s32.totalorder %s56_s12, %s56_s12 }
  0x1e   :  { %p3443_p11 = scmp.ne.s32.totalorder %s56_s12, %s3442_s1  ;;  %p3448_p13 = scmp.lt.s32.totalorder %s3442_s1, %s3442_s1 }
  0x20   :  { %p3449_p0 = por %p3448_p13, %p3447_p12 }
  0x22   :  { %p3450_p1 = pnand %p3449_p0, %p3443_p11 }
  0x24   :  { %3453 = shalt.err (!%p3450_p1)
}
  0x25   :  { %61 = dma.hbm_to_vmem [thread:$0]  %s3784_s3, 12288, %s56_s12, [#allocation9], %s3575_s7, %s3575_s7, %s3576_s8  }
  0x26   :  { %s3454_s26 = scalar_lea.hbm %s3781_s0, 64 }
  0x27   :  { %p3455_p2 = scmp.ne.s32.totalorder %s3781_s0, %s3454_s26  ;;  %p3458_p3 = scmp.lt.u32.totalorder %s3454_s26, %s3781_s0 }
  0x29   :  { %p3460_p4 = pnand %p3458_p3, %p3455_p2 }
  0x2b   :  { %3463 = shalt.err (!%p3460_p4)
}
  0x2c   :  { %s3464_s9 = scalar_lea.vmem %s23_s14, 64  ;;  %p3469_p6 = scmp.lt.s32.totalorder %s23_s14, %s23_s14 }
  0x2d   :  { %p3465_p5 = scmp.ne.s32.totalorder %s23_s14, %s3464_s9  ;;  %p3470_p7 = scmp.lt.s32.totalorder %s3464_s9, %s3464_s9 }
  0x2f   :  { %p3471_p8 = por %p3470_p7, %p3469_p6 }
  0x31   :  { %p3472_p9 = pnand %p3471_p8, %p3465_p5 }
  0x33   :  { %3475 = shalt.err (!%p3472_p9)
}
  0x34   :  { %25 = dma.hbm_to_vmem [thread:$0]  %s3781_s0, 64, %s23_s14, [#allocation3]  }
  0x35   :  { %s3579_s8 = smov [#allocation7]   ;;  %s3476_s13 = scalar_lea.hbm %s3783_s2, 12288 }
  0x36   :  { %s43_s10 = sshll.u32 %s3579_s8, 4  ;;  %p3477_p10 = scmp.ne.s32.totalorder %s3783_s2, %s3476_s13  ;;  %s44_s10 = int_to_ptr.vmem [resolvable:$true] %s43_s10 }
  0x37   :  { %p3480_p11 = scmp.lt.u32.totalorder %s3476_s13, %s3783_s2 }
  0x39   :  { %p3482_p12 = pnand %p3480_p11, %p3477_p10 }
  0x3b   :  { %3485 = shalt.err (!%p3482_p12)
}
  0x3c   :  { %s3486_s19 = scalar_lea.vmem %s44_s10, 12288  ;;  %p3491_p0 = scmp.lt.s32.totalorder %s44_s10, %s44_s10 }
  0x3d   :  { %p3487_p13 = scmp.ne.s32.totalorder %s44_s10, %s3486_s19  ;;  %p3492_p1 = scmp.lt.s32.totalorder %s3486_s19, %s3486_s19 }
  0x3f   :  { %p3493_p2 = por %p3492_p1, %p3491_p0 }
  0x41   :  { %p3494_p3 = pnand %p3493_p2, %p3487_p13 }
  0x43   :  { %3497 = shalt.err (!%p3494_p3)
}
  0x44   :  { %s3580_s0 = smov 128   ;;  %s3581_s14 = smov 8  }
  0x45   :  { %49 = dma.hbm_to_vmem [thread:$0]  %s3783_s2, 12288, %s44_s10, [#allocation6], %s3580_s0, %s3580_s0, %s3581_s14  }
  0x46   :  { %s3582_s1 = smov [#allocation10]   ;;  %s3498_s25 = scalar_lea.hbm %s3785_s4, 6144 }
  0x47   :  { %s67_s22 = sshll.u32 %s3582_s1, 4  ;;  %p3499_p4 = scmp.ne.s32.totalorder %s3785_s4, %s3498_s25  ;;  %s68_s22 = int_to_ptr.vmem [resolvable:$true] %s67_s22 }
  0x48   :  { %p3502_p5 = scmp.lt.u32.totalorder %s3498_s25, %s3785_s4 }
  0x4a   :  { %p3504_p6 = pnand %p3502_p5, %p3499_p4 }
  0x4c   :  { %3507 = shalt.err (!%p3504_p6)
}
  0x4d   :  { %s3508_s30 = scalar_lea.vmem %s68_s22, 6144  ;;  %p3513_p8 = scmp.lt.s32.totalorder %s68_s22, %s68_s22 }
  0x4e   :  { %p3509_p7 = scmp.ne.s32.totalorder %s68_s22, %s3508_s30  ;;  %p3514_p9 = scmp.lt.s32.totalorder %s3508_s30, %s3508_s30 }
  0x50   :  { %p3515_p10 = por %p3514_p9, %p3513_p8 }
  0x52   :  { %p3516_p11 = pnand %p3515_p10, %p3509_p7 }
  0x54   :  { %3519 = shalt.err (!%p3516_p11)
}
  0x55   :  { %s3583_s2 = smov 64   ;;  %s3584_s9 = smov 4  }
  0x56   :  { %73 = dma.hbm_to_vmem [thread:$0]  %s3785_s4, 6144, %s68_s22, [#allocation9], %s3583_s2, %s3583_s2, %s3584_s9  }
  0x57   :  { %s3585_s8 = smov [#allocation11]   ;;  %s3520_s13 = scalar_lea.hbm %s3786_s5, 384 }
  0x58   :  { %s80_s10 = sshll.u32 %s3585_s8, 4  ;;  %p3521_p12 = scmp.ne.s32.totalorder %s3786_s5, %s3520_s13  ;;  %s81_s10 = int_to_ptr.vmem [resolvable:$true] %s80_s10 }
  0x59   :  { %p3524_p13 = scmp.lt.u32.totalorder %s3520_s13, %s3786_s5 }
  0x5b   :  { %p3526_p0 = pnand %p3524_p13, %p3521_p12 }
  0x5d   :  { %3529 = shalt.err (!%p3526_p0)
}
  0x5e   :  { %s3530_s19 = scalar_lea.vmem %s81_s10, 384  ;;  %p3535_p2 = scmp.lt.s32.totalorder %s81_s10, %s81_s10 }
  0x5f   :  { %p3531_p1 = scmp.ne.s32.totalorder %s81_s10, %s3530_s19  ;;  %p3536_p3 = scmp.lt.s32.totalorder %s3530_s19, %s3530_s19 }
  0x61   :  { %p3537_p4 = por %p3536_p3, %p3535_p2 }
  0x63   :  { %p3538_p5 = pnand %p3537_p4, %p3531_p1 }
  0x65   :  { %3541 = shalt.err (!%p3538_p5)
}
  0x66   :  { %83 = dma.hbm_to_vmem [thread:$0]  %s3786_s5, 384, %s81_s10, [#allocation12]  }
  0x67   :  { %3564 = dma.done.wait [#allocation3], 64  }
  0x68   :  { %3565 = vsyncadd [#allocation3], 4294967232 }
  0x69   :  { %3566 = dma.done.wait [#allocation6], 18432  }
  0x6a   :  { %3567 = vsyncadd [#allocation6], 4294948864 }
  0x6b   :  { %3568 = dma.done.wait [#allocation9], 18432  }
  0x6c   :  { %3569 = vsyncadd [#allocation9], 4294948864 }
  0x6d   :  { %3570 = dma.done.wait [#allocation12], 384  }
  0x6e   :  { %3571 = vsyncadd [#allocation12], 4294966912  ;;  %v3586_v0 = vmov 0   ;;  %v2972_v1 = vld [vmem:[#allocation5 + $0x4] ss:$24 sps:$4 sm:$0xff]   ;;  %s3587_s5 = smov [#allocation13]  }
  0x6f   :  { %461 = vmatprep.mubr.bf16.mxu0 %v3586_v0  ;;  %502 = vmatprep.mubr.bf16.mxu1 %v3586_v0  ;;  %v2974_v2 = vld [vmem:[#allocation5] ss:$24 sps:$4 sm:$0xff]   ;;  %v2975_v3 = vld [vmem:[#allocation5 + $0x34] ss:$24 sps:$4 sm:$0xff]   ;;  %v2977_v4 = vld [vmem:[#allocation5 + $0x30] ss:$24 sps:$4 sm:$0xff]  }
  0x70   :  { %429 = vmatprep.subr.bf16.mxu0 %v2972_v1  ;;  %v2978_v5 = vld [vmem:[#allocation5 + $0x64] ss:$24 sps:$4 sm:$0xff]   ;;  %v2980_v6 = vld [vmem:[#allocation5 + $0x60] ss:$24 sps:$4 sm:$0xff]   ;;  %v2981_v7 = vld [vmem:[#allocation5 + $0x94] ss:$24 sps:$4 sm:$0xff]  }
  0x71   :  { %430 = vmatpush1.bf16.msra.mxu0 %v2974_v2  ;;  %v2983_v8 = vld [vmem:[#allocation5 + $0x90] ss:$24 sps:$4 sm:$0xff]   ;;  %v2984_v9 = vld [vmem:[#allocation5 + $0xc4] ss:$24 sps:$4 sm:$0xff]   ;;  %v2986_v13 = vld [vmem:[#allocation5 + $0xc0] ss:$24 sps:$4 sm:$0xff]  }
  0x72   :  { %431 = vmatprep.subr.bf16.mxu0 %v2975_v3  ;;  %v2996_v10 = vld [vmem:[#allocation5 + $0xc] ss:$24 sps:$4 sm:$0xff]   ;;  %v2998_v11 = vld [vmem:[#allocation5 + $0x8] ss:$24 sps:$4 sm:$0xff]   ;;  %v2999_v12 = vld [vmem:[#allocation5 + $0x3c] ss:$24 sps:$4 sm:$0xff]  }
  0x73   :  { %470 = vmatprep.subr.bf16.mxu1 %v2996_v10  ;;  %v3001_v14 = vld [vmem:[#allocation5 + $0x38] ss:$24 sps:$4 sm:$0xff]   ;;  %v3002_v15 = vld [vmem:[#allocation5 + $0x6c] ss:$24 sps:$4 sm:$0xff]   ;;  %v3004_v18 = vld [vmem:[#allocation5 + $0x68] ss:$24 sps:$4 sm:$0xff]  }
  0x74   :  { %471 = vmatpush1.bf16.msra.mxu1 %v2998_v11  ;;  %v2987_v16 = vld [vmem:[#allocation5 + $0xf4] ss:$24 sps:$4 sm:$0xff]   ;;  %v2989_v17 = vld [vmem:[#allocation5 + $0xf0] ss:$24 sps:$4 sm:$0xff]   ;;  %v2990_v20 = vld [vmem:[#allocation5 + $0x124] ss:$24 sps:$4 sm:$0xff]  }
  0x75   :  { %432 = vmatpush1.bf16.msra.mxu0 %v2977_v4  ;;  %472 = vmatprep.subr.bf16.mxu1 %v2999_v12  ;;  %v3005_v19 = vld [vmem:[#allocation5 + $0x9c] ss:$24 sps:$4 sm:$0xff]   ;;  %v2992_v21 = vld [vmem:[#allocation5 + $0x120] ss:$24 sps:$4 sm:$0xff]   ;;  %v3008_v23 = vld [vmem:[#allocation5 + $0xcc] ss:$24 sps:$4 sm:$0xff]  }
  0x76   :  { %433 = vmatprep.subr.bf16.mxu0 %v2978_v5  ;;  %v3007_v22 = vld [vmem:[#allocation5 + $0x98] ss:$24 sps:$4 sm:$0xff]   ;;  %v2993_v24 = vld [vmem:[#allocation5 + $0x154] ss:$24 sps:$4 sm:$0xff]   ;;  %v3010_v26 = vld [vmem:[#allocation5 + $0xc8] ss:$24 sps:$4 sm:$0xff]  }
  0x77   :  { %v2995_v25 = vld [vmem:[#allocation5 + $0x150] ss:$24 sps:$4 sm:$0xff]   ;;  %v3011_v27 = vld [vmem:[#allocation5 + $0xfc] ss:$24 sps:$4 sm:$0xff]   ;;  %v3014_v31 = vld [vmem:[#allocation5 + $0x12c] ss:$24 sps:$4 sm:$0xff]  }
  0x78   :  { %473 = vmatpush1.bf16.msra.mxu1 %v3001_v14  ;;  %v3022_v28 = vld [vmem:[#allocation5 + $0x14] ss:$24 sps:$4 sm:$0xff]   ;;  %v3697_v29 = vld [vmem:[#allocation2] sm:$0xf]  ;;  %v3013_v30 = vld [vmem:[#allocation5 + $0xf8] ss:$24 sps:$4 sm:$0xff]  }
  0x79   :  { %434 = vmatpush1.bf16.msra.mxu0 %v2980_v6  ;;  %474 = vmatprep.subr.bf16.mxu1 %v3002_v15  ;;  %v3020_v32 = vld [vmem:[#allocation5 + $0x10] ss:$24 sps:$4 sm:$0xff]   ;;  %v3025_v33 = vld [vmem:[#allocation5 + $0x44] ss:$24 sps:$4 sm:$0xff]   ;;  %v3023_v36 = vld [vmem:[#allocation5 + $0x40] ss:$24 sps:$4 sm:$0xff]  }
  0x7a   :  { %435 = vmatprep.subr.bf16.mxu0 %v2981_v7  ;;  %v3016_v34 = vld [vmem:[#allocation5 + $0x128] ss:$24 sps:$4 sm:$0xff]   ;;  %v3017_v35 = vld [vmem:[#allocation5 + $0x15c] ss:$24 sps:$4 sm:$0xff]   ;;  %v3019_v38 = vld [vmem:[#allocation5 + $0x158] ss:$24 sps:$4 sm:$0xff]  }
  0x7b   :  { %v3028_v37 = vld [vmem:[#allocation5 + $0x74] ss:$24 sps:$4 sm:$0xff]   ;;  %v3026_v39 = vld [vmem:[#allocation5 + $0x70] ss:$24 sps:$4 sm:$0xff]   ;;  %v3031_v41 = vld [vmem:[#allocation5 + $0xa4] ss:$24 sps:$4 sm:$0xff]  }
  0x7c   :  { %475 = vmatpush1.bf16.msra.mxu1 %v3004_v18  ;;  %v3046_v40 = vld [vmem:[#allocation7 + $0x4] ss:$8 sps:$4 sm:$0xff]   ;;  %v3029_v42 = vld [vmem:[#allocation5 + $0xa0] ss:$24 sps:$4 sm:$0xff]   ;;  %v3049_v44 = vld [vmem:[#allocation7 + $0x14] ss:$8 sps:$4 sm:$0xff]  }
  0x7d   :  { %436 = vmatpush1.bf16.msra.mxu0 %v2983_v8  ;;  %476 = vmatprep.subr.bf16.mxu1 %v3005_v19  ;;  %v3044_v43 = vld [vmem:[#allocation7] ss:$8 sps:$4 sm:$0xff]   ;;  %v3034_v45 = vld [vmem:[#allocation5 + $0xd4] ss:$24 sps:$4 sm:$0xff]   ;;  %v3037_v47 = vld [vmem:[#allocation5 + $0x104] ss:$24 sps:$4 sm:$0xff]   ;;  %v159_v19 = vlaneseq }
  0x7e   :  { %437 = vmatprep.subr.bf16.mxu0 %v2984_v9  ;;  %v3032_v46 = vld [vmem:[#allocation5 + $0xd0] ss:$24 sps:$4 sm:$0xff]   ;;  %v3052_v49 = vld [vmem:[#allocation7 + $0x24] ss:$8 sps:$4 sm:$0xff]   ;;  %v3035_v51 = vld [vmem:[#allocation5 + $0x100] ss:$24 sps:$4 sm:$0xff]  }
  0x7f   :  { %v3047_v48 = vld [vmem:[#allocation7 + $0x10] ss:$8 sps:$4 sm:$0xff]   ;;  %v3050_v50 = vld [vmem:[#allocation7 + $0x20] ss:$8 sps:$4 sm:$0xff]   ;;  %v3055_v52 = vld [vmem:[#allocation7 + $0x34] ss:$8 sps:$4 sm:$0xff]  }
  0x80   :  { %477 = vmatpush1.bf16.msra.mxu1 %v3007_v22  ;;  %v3040_v53 = vld [vmem:[#allocation5 + $0x134] ss:$24 sps:$4 sm:$0xff]   ;;  %v3053_v54 = vld [vmem:[#allocation7 + $0x30] ss:$8 sps:$4 sm:$0xff]   ;;  %v3043_v57 = vld [vmem:[#allocation5 + $0x164] ss:$24 sps:$4 sm:$0xff]  }
  0x81   :  { %438 = vmatpush1.bf16.msra.mxu0 %v2986_v13  ;;  %478 = vmatprep.subr.bf16.mxu1 %v3008_v23  ;;  %v3038_v55 = vld [vmem:[#allocation5 + $0x130] ss:$24 sps:$4 sm:$0xff]   ;;  %v3058_v56 = vld [vmem:[#allocation7 + $0x44] ss:$8 sps:$4 sm:$0xff]   ;;  %v3041_v59 = vld [vmem:[#allocation5 + $0x160] ss:$24 sps:$4 sm:$0xff]  }
  0x82   :  { %439 = vmatprep.subr.bf16.mxu0 %v2987_v16  ;;  %v3056_v58 = vld [vmem:[#allocation7 + $0x40] ss:$8 sps:$4 sm:$0xff]   ;;  %v3061_v60 = vld [vmem:[#allocation7 + $0x54] ss:$8 sps:$4 sm:$0xff]   ;;  %v3059_v61 = vld [vmem:[#allocation7 + $0x50] ss:$8 sps:$4 sm:$0xff]  }
  0x83   :  { %v3064_v62 = vld [vmem:[#allocation7 + $0x64] ss:$8 sps:$4 sm:$0xff]   ;;  %v3062_v63 = vld [vmem:[#allocation7 + $0x60] ss:$8 sps:$4 sm:$0xff]   ;;  %v3065_v1 = vld [vmem:[#allocation7 + $0x70] ss:$8 sps:$4 sm:$0xff]  }
  0x84   :  { %479 = vmatpush1.bf16.msra.mxu1 %v3010_v26  ;;  %v3070_v2 = vld [vmem:[#allocation7 + $0x84] ss:$8 sps:$4 sm:$0xff]   ;;  %v3068_v3 = vld [vmem:[#allocation7 + $0x80] ss:$8 sps:$4 sm:$0xff]   ;;  %v3073_v4 = vld [vmem:[#allocation7 + $0x94] ss:$8 sps:$4 sm:$0xff]  }
  0x85   :  { %440 = vmatpush1.bf16.msra.mxu0 %v2989_v17  ;;  %480 = vmatprep.subr.bf16.mxu1 %v3011_v27  ;;  %v3071_v5 = vld [vmem:[#allocation7 + $0x90] ss:$8 sps:$4 sm:$0xff]   ;;  %v3076_v6 = vld [vmem:[#allocation7 + $0xa4] ss:$8 sps:$4 sm:$0xff]   ;;  %v3074_v7 = vld [vmem:[#allocation7 + $0xa0] ss:$8 sps:$4 sm:$0xff]  }
  0x86   :  { %441 = vmatprep.subr.bf16.mxu0 %v2990_v20  ;;  %v3079_v8 = vld [vmem:[#allocation7 + $0xb4] ss:$8 sps:$4 sm:$0xff]   ;;  %v3077_v9 = vld [vmem:[#allocation7 + $0xb0] ss:$8 sps:$4 sm:$0xff]   ;;  %v3082_v10 = vld [vmem:[#allocation7 + $0xc4] ss:$8 sps:$4 sm:$0xff]  }
  0x87   :  { %v3080_v11 = vld [vmem:[#allocation7 + $0xc0] ss:$8 sps:$4 sm:$0xff]   ;;  %v3085_v12 = vld [vmem:[#allocation7 + $0xd4] ss:$8 sps:$4 sm:$0xff]   ;;  %v3083_v13 = vld [vmem:[#allocation7 + $0xd0] ss:$8 sps:$4 sm:$0xff]  }
  0x88   :  { %481 = vmatpush1.bf16.msra.mxu1 %v3013_v30  ;;  %v3088_v14 = vld [vmem:[#allocation7 + $0xe4] ss:$8 sps:$4 sm:$0xff]   ;;  %v3086_v15 = vld [vmem:[#allocation7 + $0xe0] ss:$8 sps:$4 sm:$0xff]   ;;  %v3091_v16 = vld [vmem:[#allocation7 + $0xf4] ss:$8 sps:$4 sm:$0xff]  }
  0x89   :  { %442 = vmatpush1.bf16.msra.mxu0 %v2992_v21  ;;  %482 = vmatprep.subr.bf16.mxu1 %v3014_v31  ;;  %v3089_v17 = vld [vmem:[#allocation7 + $0xf0] ss:$8 sps:$4 sm:$0xff]   ;;  %v3094_v18 = vld [vmem:[#allocation7 + $0x104] ss:$8 sps:$4 sm:$0xff]   ;;  %v3703_v20 = vshrl.u32 %v159_v19, 7  ;;  %s2581_s14 = sshll.u32 %s3587_s5, 4  ;;  %s2582_s14 = int_to_ptr.vmem [resolvable:$true] %s2581_s14 }
  0x8a   :  { %443 = vmatprep.subr.bf16.mxu0 %v2993_v24  ;;  %v3708_v22 = vld [vmem:[#allocation11] ss:$4 sm:$0x3f]  ;;  %s3542_s20 = scalar_lea.vmem %s2582_s14, 128  ;;  %p3547_p7 = scmp.lt.s32.totalorder %s2582_s14, %s2582_s14 }
  0x8b   :  { %v3706_v21 = vsub.s32 0, %v3703_v20  ;;  %v3711_v23 = vsub.s32 1, %v3703_v20  ;;  %v3110_v19 = vld [vmem:[#allocation7 + $0x160] ss:$8 sps:$4 sm:$0xff]   ;;  %p3543_p6 = scmp.ne.s32.totalorder %s2582_s14, %s3542_s20  ;;  %p3548_p8 = scmp.lt.s32.totalorder %s3542_s20, %s3542_s20 }
  0x8c   :  { %483 = vmatpush1.bf16.msra.mxu1 %v3016_v34  ;;  %v173_v34 = vsub.s32 3, %v3703_v20 }
  0x8d   :  { %444 = vmatpush1.bf16.msra.mxu0 %v2995_v25  ;;  %484 = vmatprep.subr.bf16.mxu1 %v3017_v35  ;;  %v162_v24 = vrot.slane %v3708_v22, %v3706_v21  ;;  %v166_v25 = vrot.slane %v3708_v22, %v3711_v23  ;;  %p3549_p9 = por %p3548_p8, %p3547_p7 }
  0x8e   :  { %511 = vmatprep.subr.bf16.mxu0 %v3022_v28  ;;  %v174_v35 = vrot.slane %v3708_v22, %v173_v34 }
  0x8f   :  { %p3550_p10 = pnand %p3549_p9, %p3543_p6 }
  0x90   :  { %462 = vmatmul.mubr.bf16.vlgmr.msra.gmra.mrb[0].mxu0 %v3697_v29  ;;  %485 = vmatpush1.bf16.msra.mxu1 %v3019_v38 }
  0x91   :  { %512 = vmatpush1.bf16.msra.mxu0 %v3020_v32  ;;  %543 = vmatprep.mubr.bf16.mxu0 %v3586_v0  ;;  %v3067_v0 = vld [vmem:[#allocation7 + $0x74] ss:$8 sps:$4 sm:$0xff]  }
  0x92   :  { %513 = vmatprep.subr.bf16.mxu0 %v3025_v33  ;;  %1169 = vmatprep.subr.bf16.mxu1 %v3046_v40 }
  0x93   :  { %503 = vmatmul.mubr.bf16.vlgmr.msra.gmra.mrb[0].mxu1 %v3697_v29 }
  0x94   :  { %1170 = vmatpush1.bf16.msra.mxu1 %v3044_v43 }
  0x95   :  { %514 = vmatpush1.bf16.msra.mxu0 %v3023_v36  ;;  %1171 = vmatprep.subr.bf16.mxu1 %v3049_v44 }
  0x96   :  { %515 = vmatprep.subr.bf16.mxu0 %v3028_v37 }
  0x98   :  { %1172 = vmatpush1.bf16.msra.mxu1 %v3047_v48 }
  0x99   :  { %516 = vmatpush1.bf16.msra.mxu0 %v3026_v39  ;;  %1173 = vmatprep.subr.bf16.mxu1 %v3052_v49  ;;  %v3092_v49 = vld [vmem:[#allocation7 + $0x100] ss:$8 sps:$4 sm:$0xff]  }
  0x9a   :  { %517 = vmatprep.subr.bf16.mxu0 %v3031_v41 }
  0x9c   :  { %1174 = vmatpush1.bf16.msra.mxu1 %v3050_v50 }
  0x9d   :  { %518 = vmatpush1.bf16.msra.mxu0 %v3029_v42  ;;  %1175 = vmatprep.subr.bf16.mxu1 %v3055_v52  ;;  %v3188_v52 = vld [vmem:[#allocation8] ss:$24 sps:$4 sm:$0xff]  }
  0x9e   :  { %519 = vmatprep.subr.bf16.mxu0 %v3034_v45 }
  0xa0   :  { %1176 = vmatpush1.bf16.msra.mxu1 %v3053_v54  ;;  %v3095_v54 = vld [vmem:[#allocation7 + $0x110] ss:$8 sps:$4 sm:$0xff]  }
  0xa1   :  { %520 = vmatpush1.bf16.msra.mxu0 %v3032_v46  ;;  %1177 = vmatprep.subr.bf16.mxu1 %v3058_v56  ;;  %v3100_v56 = vld [vmem:[#allocation7 + $0x124] ss:$8 sps:$4 sm:$0xff]  }
  0xa2   :  { %521 = vmatprep.subr.bf16.mxu0 %v3037_v47 }
  0xa4   :  { %1178 = vmatpush1.bf16.msra.mxu1 %v3056_v58  ;;  %v3191_v58 = vld [vmem:[#allocation8 + $0x30] ss:$24 sps:$4 sm:$0xff]  }
  0xa5   :  { %522 = vmatpush1.bf16.msra.mxu0 %v3035_v51  ;;  %1179 = vmatprep.subr.bf16.mxu1 %v3061_v60  ;;  %v3097_v51 = vld [vmem:[#allocation7 + $0x114] ss:$8 sps:$4 sm:$0xff]  }
  0xa6   :  { %523 = vmatprep.subr.bf16.mxu0 %v3040_v53  ;;  %v3190_v53 = vld [vmem:[#allocation8 + $0x4] ss:$24 sps:$4 sm:$0xff]  }
  0xa7   :  { %v3196_v60 = vld [vmem:[#allocation8 + $0x64] ss:$24 sps:$4 sm:$0xff]  }
  0xa8   :  { %1180 = vmatpush1.bf16.msra.mxu1 %v3059_v61  ;;  %v3098_v61 = vld [vmem:[#allocation7 + $0x120] ss:$8 sps:$4 sm:$0xff]  }
  0xa9   :  { %524 = vmatpush1.bf16.msra.mxu0 %v3038_v55  ;;  %1181 = vmatprep.subr.bf16.mxu1 %v3064_v62  ;;  %v3193_v55 = vld [vmem:[#allocation8 + $0x34] ss:$24 sps:$4 sm:$0xff]  }
  0xaa   :  { %525 = vmatprep.subr.bf16.mxu0 %v3043_v57  ;;  %v3103_v62 = vld [vmem:[#allocation7 + $0x134] ss:$8 sps:$4 sm:$0xff]  }
  0xac   :  { %1182 = vmatpush1.bf16.msra.mxu1 %v3062_v63 }
  0xad   :  { %526 = vmatpush1.bf16.msra.mxu0 %v3041_v59  ;;  %1183 = vmatprep.subr.bf16.mxu1 %v3067_v0  ;;  %v3194_v0 = vld [vmem:[#allocation8 + $0x60] ss:$24 sps:$4 sm:$0xff]  }
  0xae   :  { %1909 = vmatprep.subr.bf16.mxu0 %v3190_v53  ;;  %v3128_v53 = vld [vmem:[#allocation7 + $0x1c0] ss:$8 sps:$4 sm:$0xff]  }
  0xb0   :  { %544 = vmatmul.mubr.bf16.vlgmr.msra.gmra.mrb[4].mxu0 %v3697_v29  ;;  %1184 = vmatpush1.bf16.msra.mxu1 %v3065_v1 }
  0xb1   :  { %1185 = vmatprep.subr.bf16.mxu1 %v3070_v2  ;;  %1910 = vmatpush1.bf16.msra.mxu0 %v3188_v52  ;;  %v3130_v52 = vld [vmem:[#allocation7 + $0x1c4] ss:$8 sps:$4 sm:$0xff]  }
  0xb2   :  { %1911 = vmatprep.subr.bf16.mxu0 %v3193_v55 }
  0xb4   :  { %1186 = vmatpush1.bf16.msra.mxu1 %v3068_v3  ;;  %v3199_v3 = vld [vmem:[#allocation8 + $0x94] ss:$24 sps:$4 sm:$0xff]  }
  0xb5   :  { %1187 = vmatprep.subr.bf16.mxu1 %v3073_v4  ;;  %1912 = vmatpush1.bf16.msra.mxu0 %v3191_v58  ;;  %v3101_v4 = vld [vmem:[#allocation7 + $0x130] ss:$8 sps:$4 sm:$0xff]   ;;  %v3136_v58 = vld [vmem:[#allocation7 + $0x1e4] ss:$8 sps:$4 sm:$0xff]  }
  0xb6   :  { %1913 = vmatprep.subr.bf16.mxu0 %v3196_v60  ;;  %v3134_v60 = vld [vmem:[#allocation7 + $0x1e0] ss:$8 sps:$4 sm:$0xff]  }
  0xb8   :  { %1188 = vmatpush1.bf16.msra.mxu1 %v3071_v5 }
  0xb9   :  { %1189 = vmatprep.subr.bf16.mxu1 %v3076_v6  ;;  %v3106_v6 = vld [vmem:[#allocation7 + $0x144] ss:$8 sps:$4 sm:$0xff]   ;;  %1914 = vmatpush1.bf16.msra.mxu0 %v3194_v0  ;;  %v3137_v0 = vld [vmem:[#allocation7 + $0x1f0] ss:$8 sps:$4 sm:$0xff]  }
  0xba   :  { %1915 = vmatprep.subr.bf16.mxu0 %v3199_v3  ;;  %v3142_v3 = vld [vmem:[#allocation7 + $0x204] ss:$8 sps:$4 sm:$0xff]  }
  0xbc   :  { %1190 = vmatpush1.bf16.msra.mxu1 %v3074_v7 }
  0xbd   :  { %1191 = vmatprep.subr.bf16.mxu1 %v3079_v8 }
  0xc0   :  { %1192 = vmatpush1.bf16.msra.mxu1 %v3077_v9  ;;  %v3197_v9 = vld [vmem:[#allocation8 + $0x90] ss:$24 sps:$4 sm:$0xff]  }
  0xc1   :  { %1193 = vmatprep.subr.bf16.mxu1 %v3082_v10  ;;  %v3202_v10 = vld [vmem:[#allocation8 + $0xc4] ss:$24 sps:$4 sm:$0xff]   ;;  %1916 = vmatpush1.bf16.msra.mxu0 %v3197_v9 }
  0xc2   :  { %1917 = vmatprep.subr.bf16.mxu0 %v3202_v10  ;;  %v3148_v9 = vld [vmem:[#allocation7 + $0x224] ss:$8 sps:$4 sm:$0xff]   ;;  %v3146_v10 = vld [vmem:[#allocation7 + $0x220] ss:$8 sps:$4 sm:$0xff]  }
  0xc4   :  { %1194 = vmatpush1.bf16.msra.mxu1 %v3080_v11  ;;  %v3104_v11 = vld [vmem:[#allocation7 + $0x140] ss:$8 sps:$4 sm:$0xff]  }
  0xc5   :  { %1195 = vmatprep.subr.bf16.mxu1 %v3085_v12  ;;  %v3109_v12 = vld [vmem:[#allocation7 + $0x154] ss:$8 sps:$4 sm:$0xff]  }
  0xc8   :  { %1196 = vmatpush1.bf16.msra.mxu1 %v3083_v13  ;;  %v3200_v13 = vld [vmem:[#allocation8 + $0xc0] ss:$24 sps:$4 sm:$0xff]  }
  0xc9   :  { %1197 = vmatprep.subr.bf16.mxu1 %v3088_v14  ;;  %v3205_v14 = vld [vmem:[#allocation8 + $0xf4] ss:$24 sps:$4 sm:$0xff]   ;;  %1918 = vmatpush1.bf16.msra.mxu0 %v3200_v13 }
  0xca   :  { %1919 = vmatprep.subr.bf16.mxu0 %v3205_v14  ;;  %v3154_v13 = vld [vmem:[#allocation7 + $0x244] ss:$8 sps:$4 sm:$0xff]   ;;  %v3152_v14 = vld [vmem:[#allocation7 + $0x240] ss:$8 sps:$4 sm:$0xff]  }
  0xcc   :  { %1198 = vmatpush1.bf16.msra.mxu1 %v3086_v15  ;;  %v3107_v15 = vld [vmem:[#allocation7 + $0x150] ss:$8 sps:$4 sm:$0xff]  }
  0xcd   :  { %1199 = vmatprep.subr.bf16.mxu1 %v3091_v16  ;;  %v3112_v16 = vld [vmem:[#allocation7 + $0x164] ss:$8 sps:$4 sm:$0xff]  }
  0xd0   :  { %1200 = vmatpush1.bf16.msra.mxu1 %v3089_v17  ;;  %v3203_v17 = vld [vmem:[#allocation8 + $0xf0] ss:$24 sps:$4 sm:$0xff]  }
  0xd1   :  { %1210 = vmatprep.subr.bf16.mxu1 %v3094_v18  ;;  %v3208_v18 = vld [vmem:[#allocation8 + $0x124] ss:$24 sps:$4 sm:$0xff]   ;;  %1920 = vmatpush1.bf16.msra.mxu0 %v3203_v17 }
  0xd2   :  { %1921 = vmatprep.subr.bf16.mxu0 %v3208_v18  ;;  %v3160_v17 = vld [vmem:[#allocation7 + $0x264] ss:$8 sps:$4 sm:$0xff]   ;;  %v3158_v18 = vld [vmem:[#allocation7 + $0x260] ss:$8 sps:$4 sm:$0xff]  }
 0x163   :  { %v463_v26 = vpop.f32.mrb[0].mxu0 }
 0x164   :  { %v464_v27 = vadd.f32 %v463_v26, %v162_v24  ;;  %v465_v28 = vpop.f32.mrb[1].mxu0  ;;  %v3115_v24 = vld [vmem:[#allocation7 + $0x174] ss:$8 sps:$4 sm:$0xff]   ;;  %v3206_v26 = vld [vmem:[#allocation8 + $0x120] ss:$24 sps:$4 sm:$0xff]  }
 0x165   :  { %v466_v29 = vadd.f32 %v465_v28, %v166_v25  ;;  %v467_v30 = vpop.f32.mrb[2].mxu0  ;;  %v169_v25 = vsub.s32 2, %v3703_v20  ;;  %v3211_v28 = vld [vmem:[#allocation8 + $0x154] ss:$24 sps:$4 sm:$0xff]   ;;  %1922 = vmatpush1.bf16.msra.mxu0 %v3206_v26  ;;  %v177_v26 = vsub.s32 4, %v3703_v20 }
 0x166   :  { %v552_v31 = vmul.f32 0.5, %v464_v27  ;;  %v468_v32 = vpop.f32.mrb[3].mxu0  ;;  %v3721_v36 = vpop.f32.mrb[0].mxu1  ;;  %v181_v27 = vsub.s32 5, %v3703_v20  ;;  %v3118_v30 = vld [vmem:[#allocation7 + $0x184] ss:$8 sps:$4 sm:$0xff]   ;;  %1923 = vmatprep.subr.bf16.mxu0 %v3211_v28 }
 0x167   :  { %v553_v33 = vmul.f32 0.5, %v466_v29  ;;  %v506_v37 = vpop.f32.mrb[1].mxu1  ;;  %v3113_v29 = vld [vmem:[#allocation7 + $0x170] ss:$8 sps:$4 sm:$0xff]   ;;  %v3166_v28 = vld [vmem:[#allocation7 + $0x284] ss:$8 sps:$4 sm:$0xff]  }
 0x168   :  { %3380 = vtanh.f32 %v552_v31  ;;  %v507_v38 = vadd.f32 %v506_v37, %v174_v35  ;;  %v508_v39 = vpop.f32.mrb[2].mxu1  ;;  %v170_v31 = vrot.slane %v3708_v22, %v169_v25  ;;  %v3209_v32 = vld [vmem:[#allocation8 + $0x150] ss:$24 sps:$4 sm:$0xff]   ;;  %v3214_v35 = vld [vmem:[#allocation8 + $0x184] ss:$24 sps:$4 sm:$0xff]  }
 0x169   :  { %3382 = vtanh.f32 %v553_v33  ;;  %v509_v40 = vpop.f32.mrb[3].mxu1  ;;  %v182_v33 = vrot.slane %v3708_v22, %v181_v27  ;;  %v3116_v37 = vld [vmem:[#allocation7 + $0x180] ss:$8 sps:$4 sm:$0xff]   ;;  %1924 = vmatpush1.bf16.msra.mxu0 %v3209_v32  ;;  %v3167_v32 = vld [vmem:[#allocation7 + $0x290] ss:$8 sps:$4 sm:$0xff]  }
 0x16a   :  { %v555_v42 = vmul.f32 0.5, %v507_v38  ;;  %v3121_v38 = vld [vmem:[#allocation7 + $0x194] ss:$8 sps:$4 sm:$0xff]   ;;  %v505_v39 = vadd.f32 %v3721_v36, %v170_v31  ;;  %v3212_v40 = vld [vmem:[#allocation8 + $0x180] ss:$24 sps:$4 sm:$0xff]   ;;  %1925 = vmatprep.subr.bf16.mxu0 %v3214_v35 }
 0x16b   :  { %v3218_v36 = vld [vmem:[#allocation8 + $0x1e0] ss:$24 sps:$4 sm:$0xff]   ;;  %v3169_v31 = vld [vmem:[#allocation7 + $0x294] ss:$8 sps:$4 sm:$0xff]   ;;  %v3172_v35 = vld [vmem:[#allocation7 + $0x2a4] ss:$8 sps:$4 sm:$0xff]  }
 0x16c   :  { %3384 = vtanh.f32 %v555_v42  ;;  %v3217_v42 = vld [vmem:[#allocation8 + $0x1b4] ss:$24 sps:$4 sm:$0xff]  }
 0x16d   :  { %1926 = vmatpush1.bf16.msra.mxu0 %v3212_v40  ;;  %v3173_v40 = vld [vmem:[#allocation7 + $0x2b0] ss:$8 sps:$4 sm:$0xff]  }
 0x16e   :  { %1927 = vmatprep.subr.bf16.mxu0 %v3217_v42  ;;  %v3181_v42 = vld [vmem:[#allocation7 + $0x2d4] ss:$8 sps:$4 sm:$0xff]  }
 0x172   :  { %v3381_v41 = vpop.eup %3380 }
 0x173   :  { %v3383_v43 = vpop.eup %3382  ;;  %v564_v44 = vmul.f32 0.5, %v3381_v41 }
 0x174   :  { %v565_v45 = vmul.f32 0.5, %v3383_v43  ;;  %v3119_v43 = vld [vmem:[#allocation7 + $0x190] ss:$8 sps:$4 sm:$0xff]  }
 0x175   :  { %v570_v46 = vadd.f32 0.5, %v564_v44  ;;  %v3124_v44 = vld [vmem:[#allocation7 + $0x1a4] ss:$8 sps:$4 sm:$0xff]  }
 0x176   :  { %v571_v47 = vadd.f32 0.5, %v565_v45  ;;  %v3385_v57 = vpop.eup %3384  ;;  %v554_v45 = vmul.f32 0.5, %v505_v39  ;;  %v3175_v39 = vld [vmem:[#allocation7 + $0x2b4] ss:$8 sps:$4 sm:$0xff]  }
 0x177   :  { %v576_v50 = vpack.c.bf16 %v570_v46, %v570_v46  ;;  %v567_v59 = vmul.f32 0.5, %v3385_v57  ;;  %v3215_v46 = vld [vmem:[#allocation8 + $0x1b0] ss:$24 sps:$4 sm:$0xff]  }
 0x178   :  { %v577_v48 = vpack.c.bf16 %v571_v47, %v571_v47  ;;  %3386 = vtanh.f32 %v554_v45  ;;  %1928 = vmatpush1.bf16.msra.mxu0 %v3215_v46  ;;  %v3182_v45 = vld [vmem:[#allocation7 + $0x2e0] ss:$8 sps:$4 sm:$0xff]  }
 0x179   :  { %v573_v63 = vadd.f32 0.5, %v567_v59 }
 0x17a   :  { %1201 = vmatprep.mubr.bf16.mxu1 %v577_v48  ;;  %v3220_v48 = vld [vmem:[#allocation8 + $0x1e4] ss:$24 sps:$4 sm:$0xff]  }
 0x17b   :  { %1202 = vmatmul.mubr.bf16.vlgmr.msra.gmra.mrb[4].mxu1 %v576_v50  ;;  %v579_v1 = vpack.c.bf16 %v573_v63, %v573_v63  ;;  %v3127_v50 = vld [vmem:[#allocation7 + $0x1b4] ss:$8 sps:$4 sm:$0xff]   ;;  %1929 = vmatprep.subr.bf16.mxu0 %v3220_v48  ;;  %v3185_v48 = vld [vmem:[#allocation7 + $0x2f0] ss:$8 sps:$4 sm:$0xff]  }
 0x17c   :  { %1211 = vmatpush1.bf16.msra.mxu1 %v3092_v49  ;;  %v3122_v49 = vld [vmem:[#allocation7 + $0x1a0] ss:$8 sps:$4 sm:$0xff]   ;;  %1930 = vmatpush1.bf16.msra.mxu0 %v3218_v36  ;;  %v3223_v36 = vld [vmem:[#allocation8 + $0x214] ss:$24 sps:$4 sm:$0xff]  }
 0x17d   :  { %1212 = vmatprep.subr.bf16.mxu1 %v3097_v51  ;;  %1242 = vmatprep.mubr.bf16.mxu1 %v579_v1  ;;  %v3125_v51 = vld [vmem:[#allocation7 + $0x1b0] ss:$8 sps:$4 sm:$0xff]  }
 0x17e   :  { %1931 = vmatprep.subr.bf16.mxu0 %v3223_v36  ;;  %v3274_v36 = vld [vmem:[#allocation8 + $0x24c] ss:$24 sps:$4 sm:$0xff]  }
 0x180   :  { %1213 = vmatpush1.bf16.msra.mxu1 %v3095_v54  ;;  %v3133_v54 = vld [vmem:[#allocation7 + $0x1d4] ss:$8 sps:$4 sm:$0xff]  }
 0x181   :  { %1214 = vmatprep.subr.bf16.mxu1 %v3100_v56  ;;  %v3131_v56 = vld [vmem:[#allocation7 + $0x1d0] ss:$8 sps:$4 sm:$0xff]  }
 0x182   :  { %v3387_v55 = vpop.eup %3386 }
 0x183   :  { %v3723_v2 = vpop.f32.mrb[4].mxu0  ;;  %v566_v59 = vmul.f32 0.5, %v3387_v55  ;;  %v3227_v55 = vld [vmem:[#allocation8 + $0x270] ss:$24 sps:$4 sm:$0xff]  }
 0x184   :  { %1215 = vmatpush1.bf16.msra.mxu1 %v3098_v61  ;;  %v547_v5 = vpop.f32.mrb[5].mxu0 }
 0x185   :  { %1216 = vmatprep.subr.bf16.mxu1 %v3103_v62  ;;  %v549_v7 = vpop.f32.mrb[6].mxu0  ;;  %v548_v41 = vadd.f32 %v547_v5, %v182_v33  ;;  %v3139_v62 = vld [vmem:[#allocation7 + $0x1f4] ss:$8 sps:$4 sm:$0xff]   ;;  %v572_v63 = vadd.f32 0.5, %v566_v59  ;;  %v3140_v5 = vld [vmem:[#allocation7 + $0x200] ss:$8 sps:$4 sm:$0xff]  }
 0x186   :  { %v550_v8 = vpop.f32.mrb[7].mxu0  ;;  %v3145_v7 = vld [vmem:[#allocation7 + $0x214] ss:$8 sps:$4 sm:$0xff]   ;;  %v3233_v59 = vld [vmem:[#allocation8 + $0x2d0] ss:$24 sps:$4 sm:$0xff]  }
 0x187   :  { %v557_v47 = vmul.f32 0.5, %v548_v41  ;;  %v3143_v8 = vld [vmem:[#allocation7 + $0x210] ss:$8 sps:$4 sm:$0xff]   ;;  %v3178_v41 = vld [vmem:[#allocation7 + $0x2c4] ss:$8 sps:$4 sm:$0xff]  }
 0x188   :  { %1217 = vmatpush1.bf16.msra.mxu1 %v3101_v4  ;;  %v578_v4 = vpack.c.bf16 %v572_v63, %v572_v63 }
 0x189   :  { %1218 = vmatprep.subr.bf16.mxu1 %v3106_v6  ;;  %3388 = vtanh.f32 %v557_v47  ;;  %v3187_v47 = vld [vmem:[#allocation7 + $0x2f4] ss:$8 sps:$4 sm:$0xff]  }
 0x18c   :  { %1219 = vmatpush1.bf16.msra.mxu1 %v3104_v11  ;;  %v3151_v11 = vld [vmem:[#allocation7 + $0x234] ss:$8 sps:$4 sm:$0xff]  }
 0x18d   :  { %1220 = vmatprep.subr.bf16.mxu1 %v3109_v12  ;;  %v3149_v12 = vld [vmem:[#allocation7 + $0x230] ss:$8 sps:$4 sm:$0xff]  }
 0x190   :  { %1221 = vmatpush1.bf16.msra.mxu1 %v3107_v15  ;;  %v3157_v15 = vld [vmem:[#allocation7 + $0x254] ss:$8 sps:$4 sm:$0xff]  }
 0x191   :  { %1222 = vmatprep.subr.bf16.mxu1 %v3112_v16  ;;  %v3155_v16 = vld [vmem:[#allocation7 + $0x250] ss:$8 sps:$4 sm:$0xff]  }
 0x193   :  { %v3389_v57 = vpop.eup %3388 }
 0x194   :  { %1223 = vmatpush1.bf16.msra.mxu1 %v3110_v19  ;;  %v569_v61 = vmul.f32 0.5, %v3389_v57  ;;  %v3163_v19 = vld [vmem:[#allocation7 + $0x274] ss:$8 sps:$4 sm:$0xff]   ;;  %v3230_v57 = vld [vmem:[#allocation8 + $0x2a0] ss:$24 sps:$4 sm:$0xff]  }
 0x195   :  { %1224 = vmatprep.subr.bf16.mxu1 %v3115_v24  ;;  %v3161_v24 = vld [vmem:[#allocation7 + $0x270] ss:$8 sps:$4 sm:$0xff]  }
 0x196   :  { %v575_v1 = vadd.f32 0.5, %v569_v61  ;;  %v105_v61 = vld [vmem:[#allocation11 + $0x1] ss:$4 sm:$0x3] }
 0x197   :  { %v686_v63 = vrot.slane %v105_v61, %v3711_v23 }
 0x198   :  { %1225 = vmatpush1.bf16.msra.mxu1 %v3113_v29  ;;  %v581_v6 = vpack.c.bf16 %v575_v1, %v575_v1  ;;  %v3164_v29 = vld [vmem:[#allocation7 + $0x280] ss:$8 sps:$4 sm:$0xff]  }
 0x199   :  { %1226 = vmatprep.subr.bf16.mxu1 %v3118_v30  ;;  %v178_v30 = vrot.slane %v3708_v22, %v177_v26  ;;  %v3176_v22 = vld [vmem:[#allocation7 + $0x2c0] ss:$8 sps:$4 sm:$0xff]  }
 0x19b   :  { %v546_v33 = vadd.f32 %v3723_v2, %v178_v30  ;;  %v3184_v2 = vld [vmem:[#allocation7 + $0x2e4] ss:$8 sps:$4 sm:$0xff]  }
 0x19c   :  { %1227 = vmatpush1.bf16.msra.mxu1 %v3116_v37  ;;  %v3244_v30 = vld [vmem:[#allocation8 + $0x6c] ss:$24 sps:$4 sm:$0xff]  }
 0x19d   :  { %1228 = vmatprep.subr.bf16.mxu1 %v3121_v38  ;;  %v556_v37 = vmul.f32 0.5, %v546_v33  ;;  %v3170_v38 = vld [vmem:[#allocation7 + $0x2a0] ss:$8 sps:$4 sm:$0xff]   ;;  %v3247_v33 = vld [vmem:[#allocation8 + $0x9c] ss:$24 sps:$4 sm:$0xff]  }
 0x19f   :  { %3390 = vtanh.f32 %v556_v37  ;;  %v3250_v37 = vld [vmem:[#allocation8 + $0xcc] ss:$24 sps:$4 sm:$0xff]  }
 0x1a0   :  { %1229 = vmatpush1.bf16.msra.mxu1 %v3119_v43  ;;  %v3179_v43 = vld [vmem:[#allocation7 + $0x2d0] ss:$8 sps:$4 sm:$0xff]  }
 0x1a1   :  { %1230 = vmatprep.subr.bf16.mxu1 %v3124_v44 }
 0x1a4   :  { %1231 = vmatpush1.bf16.msra.mxu1 %v3122_v49 }
 0x1a5   :  { %1232 = vmatprep.subr.bf16.mxu1 %v3127_v50 }
 0x1a8   :  { %1233 = vmatpush1.bf16.msra.mxu1 %v3125_v51  ;;  %v3221_v51 = vld [vmem:[#allocation8 + $0x210] ss:$24 sps:$4 sm:$0xff]  }
 0x1a9   :  { %1234 = vmatprep.subr.bf16.mxu1 %v3130_v52  ;;  %v3391_v44 = vpop.eup %3390  ;;  %1932 = vmatpush1.bf16.msra.mxu0 %v3221_v51  ;;  %v3226_v52 = vld [vmem:[#allocation8 + $0x244] ss:$24 sps:$4 sm:$0xff]   ;;  %v3272_v51 = vld [vmem:[#allocation8 + $0x248] ss:$24 sps:$4 sm:$0xff]  }
 0x1aa   :  { %v568_v46 = vmul.f32 0.5, %v3391_v44  ;;  %1933 = vmatprep.subr.bf16.mxu0 %v3226_v52  ;;  %v3260_v44 = vld [vmem:[#allocation8 + $0x188] ss:$24 sps:$4 sm:$0xff]   ;;  %v3277_v52 = vld [vmem:[#allocation8 + $0x27c] ss:$24 sps:$4 sm:$0xff]  }
 0x1ac   :  { %1235 = vmatpush1.bf16.msra.mxu1 %v3128_v53  ;;  %v574_v49 = vadd.f32 0.5, %v568_v46  ;;  %v3224_v53 = vld [vmem:[#allocation8 + $0x240] ss:$24 sps:$4 sm:$0xff]  }
 0x1ad   :  { %1236 = vmatprep.subr.bf16.mxu1 %v3133_v54  ;;  %1934 = vmatpush1.bf16.msra.mxu0 %v3224_v53  ;;  %v3229_v54 = vld [vmem:[#allocation8 + $0x274] ss:$24 sps:$4 sm:$0xff]   ;;  %v3263_v46 = vld [vmem:[#allocation8 + $0x1b8] ss:$24 sps:$4 sm:$0xff]  }
 0x1ae   :  { %v580_v50 = vpack.c.bf16 %v574_v49, %v574_v49  ;;  %1935 = vmatprep.subr.bf16.mxu0 %v3229_v54  ;;  %v3271_v49 = vld [vmem:[#allocation8 + $0x21c] ss:$24 sps:$4 sm:$0xff]   ;;  %v3275_v53 = vld [vmem:[#allocation8 + $0x278] ss:$24 sps:$4 sm:$0xff]   ;;  %v3280_v54 = vld [vmem:[#allocation8 + $0x2ac] ss:$24 sps:$4 sm:$0xff]  }
 0x1b0   :  { %1237 = vmatpush1.bf16.msra.mxu1 %v3131_v56  ;;  %v3232_v56 = vld [vmem:[#allocation8 + $0x2a4] ss:$24 sps:$4 sm:$0xff]  }
 0x1b1   :  { %1238 = vmatprep.subr.bf16.mxu1 %v3136_v58  ;;  %1936 = vmatpush1.bf16.msra.mxu0 %v3227_v55  ;;  %v3235_v58 = vld [vmem:[#allocation8 + $0x2d4] ss:$24 sps:$4 sm:$0xff]   ;;  %v3278_v55 = vld [vmem:[#allocation8 + $0x2a8] ss:$24 sps:$4 sm:$0xff]  }
 0x1b2   :  { %1937 = vmatprep.subr.bf16.mxu0 %v3232_v56  ;;  %v3283_v56 = vld [vmem:[#allocation8 + $0x2dc] ss:$24 sps:$4 sm:$0xff]  }
 0x1b4   :  { %1239 = vmatpush1.bf16.msra.mxu1 %v3134_v60  ;;  %v3238_v60 = vld [vmem:[#allocation8 + $0xc] ss:$24 sps:$4 sm:$0xff]  }
 0x1b5   :  { %1240 = vmatprep.subr.bf16.mxu1 %v3139_v62  ;;  %1938 = vmatpush1.bf16.msra.mxu0 %v3230_v57  ;;  %v682_v62 = vrot.slane %v105_v61, %v3706_v21  ;;  %v3281_v57 = vld [vmem:[#allocation8 + $0x2d8] ss:$24 sps:$4 sm:$0xff]  }
 0x1b6   :  { %1939 = vmatprep.subr.bf16.mxu0 %v3235_v58  ;;  %v3286_v58 = vld [vmem:[#allocation8 + $0x14] ss:$24 sps:$4 sm:$0xff]   ;;  %v3287_v61 = vld [vmem:[#allocation8 + $0x40] ss:$24 sps:$4 sm:$0xff]  }
 0x1b8   :  { %1241 = vmatpush1.bf16.msra.mxu1 %v3137_v0 }
 0x1b9   :  { %1251 = vmatprep.subr.bf16.mxu1 %v3142_v3  ;;  %1940 = vmatpush1.bf16.msra.mxu0 %v3233_v59  ;;  %v3284_v59 = vld [vmem:[#allocation8 + $0x10] ss:$24 sps:$4 sm:$0xff]  }
 0x1ba   :  { %1950 = vmatprep.subr.bf16.mxu0 %v3238_v60  ;;  %v3289_v60 = vld [vmem:[#allocation8 + $0x44] ss:$24 sps:$4 sm:$0xff]  }
 0x1bb   :  { %1243 = vmatmul.mubr.bf16.vlgmr.msra.gmra.mrb[4].mxu1 %v578_v4 }
 0x1bc   :  { %1252 = vmatpush1.bf16.msra.mxu1 %v3140_v5  ;;  %1283 = vmatprep.mubr.bf16.mxu1 %v581_v6 }
 0x1bd   :  { %1253 = vmatprep.subr.bf16.mxu1 %v3145_v7 }
 0x1c0   :  { %1254 = vmatpush1.bf16.msra.mxu1 %v3143_v8 }
 0x1c1   :  { %1255 = vmatprep.subr.bf16.mxu1 %v3148_v9 }
 0x1c4   :  { %1256 = vmatpush1.bf16.msra.mxu1 %v3146_v10 }
 0x1c5   :  { %1257 = vmatprep.subr.bf16.mxu1 %v3151_v11 }
 0x1c8   :  { %1258 = vmatpush1.bf16.msra.mxu1 %v3149_v12 }
 0x1c9   :  { %1259 = vmatprep.subr.bf16.mxu1 %v3154_v13 }
 0x1cc   :  { %1260 = vmatpush1.bf16.msra.mxu1 %v3152_v14 }
 0x1cd   :  { %1261 = vmatprep.subr.bf16.mxu1 %v3157_v15 }
 0x1d0   :  { %1262 = vmatpush1.bf16.msra.mxu1 %v3155_v16  ;;  %v3236_v16 = vld [vmem:[#allocation8 + $0x8] ss:$24 sps:$4 sm:$0xff]  }
 0x1d1   :  { %1263 = vmatprep.subr.bf16.mxu1 %v3160_v17 }
 0x1d4   :  { %1264 = vmatpush1.bf16.msra.mxu1 %v3158_v18  ;;  %v3241_v18 = vld [vmem:[#allocation8 + $0x3c] ss:$24 sps:$4 sm:$0xff]  }
 0x1d5   :  { %1265 = vmatprep.subr.bf16.mxu1 %v3163_v19  ;;  %v3332_v19 = vld [vmem:[#allocation10 + $0x40] sm:$0xff]  }
 0x1d8   :  { %1266 = vmatpush1.bf16.msra.mxu1 %v3161_v24  ;;  %v3333_v24 = vld [vmem:[#allocation10] sm:$0xff]  }
 0x1d9   :  { %1267 = vmatprep.subr.bf16.mxu1 %v3166_v28  ;;  %v3334_v28 = vld [vmem:[#allocation10 + $0x48] sm:$0xff]  }
 0x1dc   :  { %1268 = vmatpush1.bf16.msra.mxu1 %v3164_v29  ;;  %v3239_v29 = vld [vmem:[#allocation8 + $0x38] ss:$24 sps:$4 sm:$0xff]  }
 0x1dd   :  { %1269 = vmatprep.subr.bf16.mxu1 %v3169_v31  ;;  %v3335_v31 = vld [vmem:[#allocation10 + $0x8] sm:$0xff]  }
 0x1e0   :  { %1270 = vmatpush1.bf16.msra.mxu1 %v3167_v32  ;;  %v3242_v32 = vld [vmem:[#allocation8 + $0x68] ss:$24 sps:$4 sm:$0xff]  }
 0x1e1   :  { %1271 = vmatprep.subr.bf16.mxu1 %v3172_v35  ;;  %v3245_v35 = vld [vmem:[#allocation8 + $0x98] ss:$24 sps:$4 sm:$0xff]  }
 0x1e4   :  { %1272 = vmatpush1.bf16.msra.mxu1 %v3170_v38  ;;  %v3248_v38 = vld [vmem:[#allocation8 + $0xc8] ss:$24 sps:$4 sm:$0xff]  }
 0x1e5   :  { %1273 = vmatprep.subr.bf16.mxu1 %v3175_v39  ;;  %v3253_v39 = vld [vmem:[#allocation8 + $0xfc] ss:$24 sps:$4 sm:$0xff]  }
 0x1e8   :  { %1274 = vmatpush1.bf16.msra.mxu1 %v3173_v40  ;;  %v3251_v40 = vld [vmem:[#allocation8 + $0xf8] ss:$24 sps:$4 sm:$0xff]  }
 0x1e9   :  { %1275 = vmatprep.subr.bf16.mxu1 %v3178_v41  ;;  %v3256_v41 = vld [vmem:[#allocation8 + $0x12c] ss:$24 sps:$4 sm:$0xff]  }
 0x1ec   :  { %1276 = vmatpush1.bf16.msra.mxu1 %v3176_v22  ;;  %v3254_v22 = vld [vmem:[#allocation8 + $0x128] ss:$24 sps:$4 sm:$0xff]  }
 0x1ed   :  { %1277 = vmatprep.subr.bf16.mxu1 %v3181_v42  ;;  %v3259_v42 = vld [vmem:[#allocation8 + $0x15c] ss:$24 sps:$4 sm:$0xff]  }
 0x1f0   :  { %1278 = vmatpush1.bf16.msra.mxu1 %v3179_v43  ;;  %v3257_v43 = vld [vmem:[#allocation8 + $0x158] ss:$24 sps:$4 sm:$0xff]  }
 0x1f1   :  { %1279 = vmatprep.subr.bf16.mxu1 %v3184_v2  ;;  %v3262_v2 = vld [vmem:[#allocation8 + $0x18c] ss:$24 sps:$4 sm:$0xff]  }
 0x1f4   :  { %1280 = vmatpush1.bf16.msra.mxu1 %v3182_v45  ;;  %v3265_v45 = vld [vmem:[#allocation8 + $0x1bc] ss:$24 sps:$4 sm:$0xff]  }
 0x1f5   :  { %1281 = vmatprep.subr.bf16.mxu1 %v3187_v47  ;;  %v3268_v47 = vld [vmem:[#allocation8 + $0x1ec] ss:$24 sps:$4 sm:$0xff]  }
 0x1f8   :  { %1282 = vmatpush1.bf16.msra.mxu1 %v3185_v48  ;;  %v3266_v48 = vld [vmem:[#allocation8 + $0x1e8] ss:$24 sps:$4 sm:$0xff]  }
 0x1f9   :  { %2882 = vmatprep.subr.bf16.mxu1 %v3332_v19  ;;  %v3308_v19 = vld [vmem:[#allocation8 + $0x190] ss:$24 sps:$4 sm:$0xff]  }
 0x1fb   :  { %1284 = vmatmul.mubr.bf16.vlgmr.msra.gmra.mrb[4].mxu1 %v580_v50  ;;  %v3269_v50 = vld [vmem:[#allocation8 + $0x218] ss:$24 sps:$4 sm:$0xff]  }
 0x1fc   :  { %2883 = vmatpush3.bf16.msra.mxu1 %v3333_v24  ;;  %v3313_v24 = vld [vmem:[#allocation8 + $0x1c4] ss:$24 sps:$4 sm:$0xff]  }
 0x1fd   :  { %2884 = vmatprep.subr.bf16.mxu1 %v3334_v28  ;;  %v3342_v28 = vld [vmem:[#allocation10 + $0x68] sm:$0xff]  }
 0x200   :  { %2885 = vmatpush3.bf16.msra.mxu1 %v3335_v31  ;;  %v3316_v31 = vld [vmem:[#allocation8 + $0x1f4] ss:$24 sps:$4 sm:$0xff]  }
 0x2ce   :  { %v1285_v0 = vpop.f32.mrb[4].mxu1 }
 0x2cf   :  { %v2948_v1 = vadd.f32 %v1285_v0, %v682_v62  ;;  %v1287_v3 = vpop.f32.mrb[5].mxu1  ;;  %v3292_v62 = vld [vmem:[#allocation8 + $0x74] ss:$24 sps:$4 sm:$0xff]   ;;  %v3295_v0 = vld [vmem:[#allocation8 + $0xa4] ss:$24 sps:$4 sm:$0xff]  }
 0x2d0   :  { %v2949_v4 = vadd.f32 %v1287_v3, %v686_v63  ;;  %v1289_v5 = vpop.f32.mrb[6].mxu1  ;;  %v3290_v63 = vld [vmem:[#allocation8 + $0x70] ss:$24 sps:$4 sm:$0xff]   ;;  %v3298_v3 = vld [vmem:[#allocation8 + $0xd4] ss:$24 sps:$4 sm:$0xff]  }
 0x2d1   :  { %v1292_v6 = vmul.f32 0.5, %v2948_v1  ;;  %v1290_v7 = vpop.f32.mrb[7].mxu1  ;;  %v3293_v1 = vld [vmem:[#allocation8 + $0xa0] ss:$24 sps:$4 sm:$0xff]   ;;  %v3301_v5 = vld [vmem:[#allocation8 + $0x104] ss:$24 sps:$4 sm:$0xff]  }
 0x2d2   :  { %v1293_v8 = vmul.f32 0.5, %v2949_v4  ;;  %v3296_v4 = vld [vmem:[#allocation8 + $0xd0] ss:$24 sps:$4 sm:$0xff]   ;;  %v3304_v7 = vld [vmem:[#allocation8 + $0x134] ss:$24 sps:$4 sm:$0xff]  }
 0x2d3   :  { %3392 = vtanh.f32 %v1292_v6  ;;  %v3299_v6 = vld [vmem:[#allocation8 + $0x100] ss:$24 sps:$4 sm:$0xff]  }
 0x2d4   :  { %3394 = vtanh.f32 %v1293_v8  ;;  %v3336_v8 = vld [vmem:[#allocation10 + $0x50] sm:$0xff]  }
 0x2d5   :  { %2886 = vmatprep.subr.bf16.mxu1 %v3336_v8 }
 0x2dd   :  { %v3393_v9 = vpop.eup %3392 }
 0x2de   :  { %v3395_v10 = vpop.eup %3394  ;;  %v1296_v11 = vmul.f32 0.5, %v3393_v9  ;;  %v3337_v9 = vld [vmem:[#allocation10 + $0x10] sm:$0xff]  }
 0x2df   :  { %v1297_v12 = vmul.f32 0.5, %v3395_v10  ;;  %v3302_v10 = vld [vmem:[#allocation8 + $0x130] ss:$24 sps:$4 sm:$0xff]   ;;  %2887 = vmatpush3.bf16.msra.mxu1 %v3337_v9 }
 0x2e0   :  { %v1298_v13 = vadd.f32 0.5, %v1296_v11  ;;  %v3307_v11 = vld [vmem:[#allocation8 + $0x164] ss:$24 sps:$4 sm:$0xff]  }
 0x2e1   :  { %v1299_v14 = vadd.f32 0.5, %v1297_v12  ;;  %v3338_v12 = vld [vmem:[#allocation10 + $0x58] sm:$0xff]  }
 0x2e2   :  { %v3743_v17 = vpack.c.bf16 %v1298_v13, %v1298_v13  ;;  %v3339_v13 = vld [vmem:[#allocation10 + $0x18] sm:$0xff]   ;;  %2888 = vmatprep.subr.bf16.mxu1 %v3338_v12 }
 0x2e3   :  { %v3741_v15 = vpack.c.bf16 %v1299_v14, %v1299_v14  ;;  %v3305_v14 = vld [vmem:[#allocation8 + $0x160] ss:$24 sps:$4 sm:$0xff]   ;;  %2889 = vmatpush3.bf16.msra.mxu1 %v3339_v13 }
 0x2e5   :  { %1941 = vmatprep.mubr.bf16.mxu0 %v3741_v15 }
 0x2e6   :  { %1942 = vmatmul.mubr.bf16.vlgmr.msra.gmra.mrb[8].mxu0 %v3743_v17 }
 0x2e7   :  { %1951 = vmatpush1.bf16.msra.mxu0 %v3236_v16  ;;  %1982 = vmatprep.mubr.bf16.mxu0 %v3741_v15  ;;  %v3340_v16 = vld [vmem:[#allocation10 + $0x60] sm:$0xff]  }
 0x2e8   :  { %1952 = vmatprep.subr.bf16.mxu0 %v3241_v18  ;;  %v3341_v18 = vld [vmem:[#allocation10 + $0x20] sm:$0xff]   ;;  %2890 = vmatprep.subr.bf16.mxu1 %v3340_v16 }
 0x2e9   :  { %2891 = vmatpush3.bf16.msra.mxu1 %v3341_v18  ;;  %v3365_v16 = vld [vmem:[#allocation10 + $0x100] sm:$0xff]  }
 0x2ea   :  { %2892 = vmatprep.subr.bf16.mxu1 %v3342_v28  ;;  %v3369_v28 = vld [vmem:[#allocation10 + $0x110] sm:$0xff]  }
 0x2eb   :  { %1953 = vmatpush1.bf16.msra.mxu0 %v3239_v29  ;;  %v3343_v29 = vld [vmem:[#allocation10 + $0x28] sm:$0xff]  }
 0x2ec   :  { %1954 = vmatprep.subr.bf16.mxu0 %v3244_v30  ;;  %v3311_v30 = vld [vmem:[#allocation8 + $0x1c0] ss:$24 sps:$4 sm:$0xff]  }
 0x2ed   :  { %2893 = vmatpush3.bf16.msra.mxu1 %v3343_v29  ;;  %v3370_v29 = vld [vmem:[#allocation10 + $0x158] sm:$0xff]  }
 0x2ef   :  { %1955 = vmatpush1.bf16.msra.mxu0 %v3242_v32  ;;  %v3344_v32 = vld [vmem:[#allocation10 + $0x70] sm:$0xff]  }
 0x2f0   :  { %1956 = vmatprep.subr.bf16.mxu0 %v3247_v33  ;;  %v3345_v33 = vld [vmem:[#allocation10 + $0x30] sm:$0xff]   ;;  %2894 = vmatprep.subr.bf16.mxu1 %v3344_v32  ;;  %v3373_v32 = vld [vmem:[#allocation10 + $0x120] sm:$0xff]  }
 0x2f1   :  { %2895 = vmatpush3.bf16.msra.mxu1 %v3345_v33  ;;  %v3374_v33 = vld [vmem:[#allocation10 + $0x168] sm:$0xff]  }
 0x2f3   :  { %1957 = vmatpush1.bf16.msra.mxu0 %v3245_v35  ;;  %v3314_v35 = vld [vmem:[#allocation8 + $0x1f0] ss:$24 sps:$4 sm:$0xff]  }
 0x2f4   :  { %1958 = vmatprep.subr.bf16.mxu0 %v3250_v37  ;;  %v3319_v37 = vld [vmem:[#allocation8 + $0x224] ss:$24 sps:$4 sm:$0xff]  }
 0x2f7   :  { %1959 = vmatpush1.bf16.msra.mxu0 %v3248_v38  ;;  %v3346_v38 = vld [vmem:[#allocation10 + $0x78] sm:$0xff]  }
 0x2f8   :  { %1960 = vmatprep.subr.bf16.mxu0 %v3253_v39  ;;  %v3347_v39 = vld [vmem:[#allocation10 + $0x38] sm:$0xff]   ;;  %2896 = vmatprep.subr.bf16.mxu1 %v3346_v38  ;;  %v3377_v38 = vld [vmem:[#allocation10 + $0x130] sm:$0xff]  }
 0x2f9   :  { %2897 = vmatpush3.bf16.msra.mxu1 %v3347_v39  ;;  %v3378_v39 = vld [vmem:[#allocation10 + $0x178] sm:$0xff]  }
 0x2fb   :  { %1961 = vmatpush1.bf16.msra.mxu0 %v3251_v40  ;;  %v3317_v40 = vld [vmem:[#allocation8 + $0x220] ss:$24 sps:$4 sm:$0xff]  }
 0x2fc   :  { %1962 = vmatprep.subr.bf16.mxu0 %v3256_v41  ;;  %v3322_v41 = vld [vmem:[#allocation8 + $0x254] ss:$24 sps:$4 sm:$0xff]  }
 0x2ff   :  { %1963 = vmatpush1.bf16.msra.mxu0 %v3254_v22  ;;  %v3320_v22 = vld [vmem:[#allocation8 + $0x250] ss:$24 sps:$4 sm:$0xff]  }
 0x300   :  { %1964 = vmatprep.subr.bf16.mxu0 %v3259_v42  ;;  %v3325_v42 = vld [vmem:[#allocation8 + $0x284] ss:$24 sps:$4 sm:$0xff]  }
 0x303   :  { %1965 = vmatpush1.bf16.msra.mxu0 %v3257_v43  ;;  %v3323_v43 = vld [vmem:[#allocation8 + $0x280] ss:$24 sps:$4 sm:$0xff]  }
 0x304   :  { %1966 = vmatprep.subr.bf16.mxu0 %v3262_v2  ;;  %v3328_v2 = vld [vmem:[#allocation8 + $0x2b4] ss:$24 sps:$4 sm:$0xff]  }
 0x307   :  { %1967 = vmatpush1.bf16.msra.mxu0 %v3260_v44  ;;  %v3326_v44 = vld [vmem:[#allocation8 + $0x2b0] ss:$24 sps:$4 sm:$0xff]  }
 0x308   :  { %1968 = vmatprep.subr.bf16.mxu0 %v3265_v45  ;;  %v3331_v45 = vld [vmem:[#allocation8 + $0x2e4] ss:$24 sps:$4 sm:$0xff]  }
 0x30b   :  { %1969 = vmatpush1.bf16.msra.mxu0 %v3263_v46  ;;  %v3329_v46 = vld [vmem:[#allocation8 + $0x2e0] ss:$24 sps:$4 sm:$0xff]  }
 0x30c   :  { %1970 = vmatprep.subr.bf16.mxu0 %v3268_v47  ;;  %v3348_v47 = vld [vmem:[#allocation10 + $0xc0] sm:$0xff]  }
 0x30f   :  { %1971 = vmatpush1.bf16.msra.mxu0 %v3266_v48  ;;  %v3349_v48 = vld [vmem:[#allocation10 + $0x80] sm:$0xff]  }
 0x310   :  { %1972 = vmatprep.subr.bf16.mxu0 %v3271_v49  ;;  %v3350_v49 = vld [vmem:[#allocation10 + $0xc8] sm:$0xff]  }
 0x313   :  { %1973 = vmatpush1.bf16.msra.mxu0 %v3269_v50  ;;  %v3351_v50 = vld [vmem:[#allocation10 + $0x88] sm:$0xff]  }
 0x314   :  { %1974 = vmatprep.subr.bf16.mxu0 %v3274_v36  ;;  %v3352_v36 = vld [vmem:[#allocation10 + $0xd0] sm:$0xff]  }
 0x317   :  { %1975 = vmatpush1.bf16.msra.mxu0 %v3272_v51  ;;  %v3353_v51 = vld [vmem:[#allocation10 + $0x90] sm:$0xff]  }
 0x318   :  { %1976 = vmatprep.subr.bf16.mxu0 %v3277_v52  ;;  %v3354_v52 = vld [vmem:[#allocation10 + $0xd8] sm:$0xff]  }
 0x31b   :  { %1977 = vmatpush1.bf16.msra.mxu0 %v3275_v53  ;;  %v3355_v53 = vld [vmem:[#allocation10 + $0x98] sm:$0xff]  }
 0x31c   :  { %1978 = vmatprep.subr.bf16.mxu0 %v3280_v54  ;;  %v3356_v54 = vld [vmem:[#allocation10 + $0xe0] sm:$0xff]  }
 0x31f   :  { %1979 = vmatpush1.bf16.msra.mxu0 %v3278_v55  ;;  %v3357_v55 = vld [vmem:[#allocation10 + $0xa0] sm:$0xff]  }
 0x320   :  { %1980 = vmatprep.subr.bf16.mxu0 %v3283_v56  ;;  %v3358_v56 = vld [vmem:[#allocation10 + $0xe8] sm:$0xff]  }
 0x323   :  { %1981 = vmatpush1.bf16.msra.mxu0 %v3281_v57  ;;  %v3359_v57 = vld [vmem:[#allocation10 + $0xa8] sm:$0xff]  }
 0x324   :  { %1991 = vmatprep.subr.bf16.mxu0 %v3286_v58  ;;  %v3361_v58 = vld [vmem:[#allocation10 + $0xb0] sm:$0xff]  }
 0x326   :  { %1983 = vmatmul.mubr.bf16.vlgmr.msra.gmra.mrb[12].mxu0 %v3743_v17 }
 0x327   :  { %1992 = vmatpush1.bf16.msra.mxu0 %v3284_v59  ;;  %2023 = vmatprep.mubr.bf16.mxu0 %v3741_v15  ;;  %v3310_v15 = vld [vmem:[#allocation8 + $0x194] ss:$24 sps:$4 sm:$0xff]   ;;  %v3362_v59 = vld [vmem:[#allocation10 + $0xf8] sm:$0xff]  }
 0x328   :  { %1993 = vmatprep.subr.bf16.mxu0 %v3289_v60  ;;  %v3363_v60 = vld [vmem:[#allocation10 + $0xb8] sm:$0xff]  }
 0x32b   :  { %1994 = vmatpush1.bf16.msra.mxu0 %v3287_v61  ;;  %v3364_v61 = vld [vmem:[#allocation10 + $0x140] sm:$0xff]  }
 0x32c   :  { %1995 = vmatprep.subr.bf16.mxu0 %v3292_v62  ;;  %2926 = vmatprep.subr.bf16.mxu1 %v3364_v61  ;;  %v3751_v62 = vld [vmem:[#allocation11 + $0x2] ss:$4 sm:$0x3f] }
 0x32f   :  { %1996 = vmatpush1.bf16.msra.mxu0 %v3290_v63  ;;  %v1402_v63 = vrot.slane %v3751_v62, %v3706_v21 }
 0x330   :  { %1997 = vmatprep.subr.bf16.mxu0 %v3295_v0  ;;  %v1406_v0 = vrot.slane %v3751_v62, %v3711_v23  ;;  %v3366_v23 = vld [vmem:[#allocation10 + $0x148] sm:$0xff]  }
 0x333   :  { %1998 = vmatpush1.bf16.msra.mxu0 %v3293_v1 }
 0x334   :  { %1999 = vmatprep.subr.bf16.mxu0 %v3298_v3 }
 0x337   :  { %2000 = vmatpush1.bf16.msra.mxu0 %v3296_v4 }
 0x338   :  { %2001 = vmatprep.subr.bf16.mxu0 %v3301_v5 }
 0x33b   :  { %2002 = vmatpush1.bf16.msra.mxu0 %v3299_v6 }
 0x33c   :  { %2003 = vmatprep.subr.bf16.mxu0 %v3304_v7 }
 0x33f   :  { %2004 = vmatpush1.bf16.msra.mxu0 %v3302_v10 }
 0x340   :  { %2005 = vmatprep.subr.bf16.mxu0 %v3307_v11 }
 0x343   :  { %2006 = vmatpush1.bf16.msra.mxu0 %v3305_v14 }
 0x344   :  { %2007 = vmatprep.subr.bf16.mxu0 %v3310_v15 }
 0x347   :  { %2008 = vmatpush1.bf16.msra.mxu0 %v3308_v19  ;;  %v3367_v19 = vld [vmem:[#allocation10 + $0x108] sm:$0xff]  }
 0x348   :  { %2009 = vmatprep.subr.bf16.mxu0 %v3313_v24  ;;  %v3368_v24 = vld [vmem:[#allocation10 + $0x150] sm:$0xff]  }
 0x34b   :  { %2010 = vmatpush1.bf16.msra.mxu0 %v3311_v30  ;;  %v3371_v30 = vld [vmem:[#allocation10 + $0x118] sm:$0xff]  }
 0x34c   :  { %2011 = vmatprep.subr.bf16.mxu0 %v3316_v31  ;;  %v3372_v31 = vld [vmem:[#allocation10 + $0x160] sm:$0xff]  }
 0x34f   :  { %2012 = vmatpush1.bf16.msra.mxu0 %v3314_v35  ;;  %v3375_v35 = vld [vmem:[#allocation10 + $0x128] sm:$0xff]  }
 0x350   :  { %2013 = vmatprep.subr.bf16.mxu0 %v3319_v37  ;;  %v3376_v37 = vld [vmem:[#allocation10 + $0x170] sm:$0xff]  }
 0x353   :  { %2014 = vmatpush1.bf16.msra.mxu0 %v3317_v40  ;;  %v3379_v40 = vld [vmem:[#allocation10 + $0x138] sm:$0xff]  }
 0x354   :  { %2015 = vmatprep.subr.bf16.mxu0 %v3322_v41  ;;  %v1410_v41 = vrot.slane %v3751_v62, %v169_v25 }
 0x357   :  { %2016 = vmatpush1.bf16.msra.mxu0 %v3320_v22  ;;  %v1414_v22 = vrot.slane %v3751_v62, %v173_v34  ;;  %v1418_v34 = vrot.slane %v3751_v62, %v177_v26 }
 0x358   :  { %2017 = vmatprep.subr.bf16.mxu0 %v3325_v42 }
 0x35b   :  { %2018 = vmatpush1.bf16.msra.mxu0 %v3323_v43 }
 0x35c   :  { %2019 = vmatprep.subr.bf16.mxu0 %v3328_v2 }
 0x35f   :  { %2020 = vmatpush1.bf16.msra.mxu0 %v3326_v44 }
 0x360   :  { %2021 = vmatprep.subr.bf16.mxu0 %v3331_v45 }
 0x363   :  { %2022 = vmatpush1.bf16.msra.mxu0 %v3329_v46 }
 0x364   :  { %2904 = vmatprep.subr.bf16.mxu0 %v3348_v47 }
 0x366   :  { %2024 = vmatmul.mubr.bf16.vlgmr.msra.gmra.mrb[16].mxu0 %v3743_v17  ;;  %v3360_v17 = vld [vmem:[#allocation10 + $0xf0] sm:$0xff]  }
 0x367   :  { %2905 = vmatpush3.bf16.msra.mxu0 %v3349_v48 }
 0x368   :  { %2906 = vmatprep.subr.bf16.mxu0 %v3350_v49 }
 0x36b   :  { %2907 = vmatpush3.bf16.msra.mxu0 %v3351_v50 }
 0x36c   :  { %2908 = vmatprep.subr.bf16.mxu0 %v3352_v36 }
 0x36f   :  { %2909 = vmatpush3.bf16.msra.mxu0 %v3353_v51 }
 0x370   :  { %2910 = vmatprep.subr.bf16.mxu0 %v3354_v52 }
 0x373   :  { %2911 = vmatpush3.bf16.msra.mxu0 %v3355_v53 }
 0x374   :  { %2912 = vmatprep.subr.bf16.mxu0 %v3356_v54 }
 0x377   :  { %2913 = vmatpush3.bf16.msra.mxu0 %v3357_v55  ;;  %v1422_v55 = vrot.slane %v3751_v62, %v181_v27 }
 0x378   :  { %2914 = vmatprep.subr.bf16.mxu0 %v3358_v56 }
 0x37b   :  { %2915 = vmatpush3.bf16.msra.mxu0 %v3359_v57 }
 0x37c   :  { %2916 = vmatprep.subr.bf16.mxu0 %v3360_v17 }
 0x37f   :  { %2917 = vmatpush3.bf16.msra.mxu0 %v3361_v58 }
 0x380   :  { %2918 = vmatprep.subr.bf16.mxu0 %v3362_v59 }
 0x383   :  { %2919 = vmatpush3.bf16.msra.mxu0 %v3363_v60 }
 0x3b9   :  { %v1943_v1 = vpop.f32.mrb[8].mxu0 }
 0x3ba   :  { %v1944_v3 = vadd.f32 %v1943_v1, %v1402_v63  ;;  %v1945_v4 = vpop.f32.mrb[9].mxu0 }
 0x3bb   :  { %v1946_v5 = vadd.f32 %v1945_v4, %v1406_v0  ;;  %v1947_v6 = vpop.f32.mrb[10].mxu0 }
 0x3bc   :  { %v2032_v7 = vmul.f32 0.5, %v1944_v3  ;;  %v1948_v8 = vpop.f32.mrb[11].mxu0 }
 0x3bd   :  { %v2033_v9 = vmul.f32 0.5, %v1946_v5 }
 0x3be   :  { %3396 = vtanh.f32 %v2032_v7 }
 0x3bf   :  { %3398 = vtanh.f32 %v2033_v9 }
 0x3c8   :  { %v3397_v10 = vpop.eup %3396 }
 0x3c9   :  { %v3399_v11 = vpop.eup %3398  ;;  %v2044_v12 = vmul.f32 0.5, %v3397_v10  ;;  %v2833_v10 = vld [vmem:[#allocation11 + $0x3] ss:$0 sm:$0xff] }
 0x3ca   :  { %v2045_v13 = vmul.f32 0.5, %v3399_v11 }
 0x3cb   :  { %v2050_v14 = vadd.f32 0.5, %v2044_v12 }
 0x3cc   :  { %v2051_v15 = vadd.f32 0.5, %v2045_v13 }
 0x3cd   :  { %v2056_v18 = vpack.c.bf16 %v2050_v14, %v2050_v14 }
 0x3ce   :  { %v2057_v21 = vpack.c.bf16 %v2051_v15, %v2051_v15 }
 0x3d0   :  { %2482 = vmatprep.mubr.bf16.mxu1 %v2057_v21 }
 0x3d1   :  { %2483 = vmatmul.mubr.bf16.vlgmr.msra.gmra.mrb[8].mxu1 %v2056_v18 }
 0x3d2   :  { %2927 = vmatpush3.bf16.msra.mxu1 %v3365_v16 }
 0x3d3   :  { %2928 = vmatprep.subr.bf16.mxu1 %v3366_v23 }
 0x3d6   :  { %2929 = vmatpush3.bf16.msra.mxu1 %v3367_v19 }
 0x3d7   :  { %2930 = vmatprep.subr.bf16.mxu1 %v3368_v24 }
 0x3da   :  { %2931 = vmatpush3.bf16.msra.mxu1 %v3369_v28 }
 0x3db   :  { %2932 = vmatprep.subr.bf16.mxu1 %v3370_v29 }
 0x3de   :  { %2933 = vmatpush3.bf16.msra.mxu1 %v3371_v30 }
 0x3df   :  { %2934 = vmatprep.subr.bf16.mxu1 %v3372_v31 }
 0x3e2   :  { %2935 = vmatpush3.bf16.msra.mxu1 %v3373_v32 }
 0x3e3   :  { %2936 = vmatprep.subr.bf16.mxu1 %v3374_v33 }
 0x3e6   :  { %2937 = vmatpush3.bf16.msra.mxu1 %v3375_v35 }
 0x3e7   :  { %2938 = vmatprep.subr.bf16.mxu1 %v3376_v37 }
 0x3ea   :  { %2939 = vmatpush3.bf16.msra.mxu1 %v3377_v38 }
 0x3eb   :  { %2940 = vmatprep.subr.bf16.mxu1 %v3378_v39 }
 0x3ee   :  { %2941 = vmatpush3.bf16.msra.mxu1 %v3379_v40 }
 0x3f9   :  { %v1984_v42 = vpop.f32.mrb[12].mxu0 }
 0x3fa   :  { %v1985_v43 = vadd.f32 %v1984_v42, %v1410_v41  ;;  %v1986_v2 = vpop.f32.mrb[13].mxu0 }
 0x3fb   :  { %v1987_v44 = vadd.f32 %v1986_v2, %v1414_v22  ;;  %v1988_v45 = vpop.f32.mrb[14].mxu0 }
 0x3fc   :  { %v2034_v46 = vmul.f32 0.5, %v1985_v43  ;;  %v1989_v47 = vpop.f32.mrb[15].mxu0 }
 0x3fd   :  { %v2035_v48 = vmul.f32 0.5, %v1987_v44 }
 0x3fe   :  { %3400 = vtanh.f32 %v2034_v46 }
 0x3ff   :  { %3402 = vtanh.f32 %v2035_v48 }
 0x408   :  { %v3401_v49 = vpop.eup %3400 }
 0x409   :  { %v3403_v50 = vpop.eup %3402  ;;  %v2046_v36 = vmul.f32 0.5, %v3401_v49 }
 0x40a   :  { %v2047_v51 = vmul.f32 0.5, %v3403_v50 }
 0x40b   :  { %v2052_v52 = vadd.f32 0.5, %v2046_v36 }
 0x40c   :  { %v2053_v25 = vadd.f32 0.5, %v2047_v51 }
 0x40d   :  { %v2058_v54 = vpack.c.bf16 %v2052_v52, %v2052_v52 }
 0x40e   :  { %v2059_v53 = vpack.c.bf16 %v2053_v25, %v2053_v25 }
 0x410   :  { %2522 = vmatprep.mubr.bf16.mxu0 %v2059_v53 }
 0x411   :  { %2523 = vmatmul.mubr.bf16.vlgmr.msra.gmra.mrb[20].mxu0 %v2058_v54 }
 0x439   :  { %v2025_v56 = vpop.f32.mrb[16].mxu0 }
 0x43a   :  { %v2026_v57 = vadd.f32 %v2025_v56, %v1418_v34  ;;  %v2027_v17 = vpop.f32.mrb[17].mxu0 }
 0x43b   :  { %v2028_v58 = vadd.f32 %v2027_v17, %v1422_v55  ;;  %v2029_v59 = vpop.f32.mrb[18].mxu0 }
 0x43c   :  { %v2036_v60 = vmul.f32 0.5, %v2026_v57  ;;  %v2030_v61 = vpop.f32.mrb[19].mxu0 }
 0x43d   :  { %v2037_v63 = vmul.f32 0.5, %v2028_v58 }
 0x43e   :  { %3404 = vtanh.f32 %v2036_v60 }
 0x43f   :  { %3406 = vtanh.f32 %v2037_v63 }
 0x448   :  { %v3405_v0 = vpop.eup %3404 }
 0x449   :  { %v3407_v1 = vpop.eup %3406  ;;  %v2048_v3 = vmul.f32 0.5, %v3405_v0 }
 0x44a   :  { %v2049_v4 = vmul.f32 0.5, %v3407_v1 }
 0x44b   :  { %v2054_v5 = vadd.f32 0.5, %v2048_v3 }
 0x44c   :  { %v2055_v26 = vadd.f32 0.5, %v2049_v4 }
 0x44d   :  { %v2060_v20 = vpack.c.bf16 %v2054_v5, %v2054_v5 }
 0x44e   :  { %v2061_v6 = vpack.c.bf16 %v2055_v26, %v2055_v26 }
 0x450   :  { %2562 = vmatprep.mubr.bf16.mxu1 %v2061_v6 }
 0x451   :  { %2563 = vmatmul.mubr.bf16.vlgmr.msra.gmra.mrb[12].mxu1 %v2060_v20 }
 0x4a4   :  { %v2898_v27 = vpop.f32.mrb[8].mxu1 }
 0x4a5   :  { %v2899_v62 = vpop.f32.mrb[9].mxu1 }
 0x4a6   :  { %v2900_v7 = vadd.f32 %v2899_v62, %v2898_v27  ;;  %v2901_v8 = vpop.f32.mrb[10].mxu1 }
 0x4a7   :  { %v2902_v9 = vpop.f32.mrb[11].mxu1 }
 0x4a8   :  { %v2485_v13 = vadd.f32 %v2900_v7, %v2833_v10 }
 0x4e4   :  { %v2920_v11 = vpop.f32.mrb[20].mxu0 }
 0x4e5   :  { %v2921_v12 = vpop.f32.mrb[21].mxu0 }
 0x4e6   :  { %v2922_v14 = vadd.f32 %v2921_v12, %v2920_v11  ;;  %v2923_v15 = vpop.f32.mrb[22].mxu0 }
 0x4e7   :  { %v2924_v21 = vpop.f32.mrb[23].mxu0 }
 0x4e8   :  { %v2525_v16 = vadd.f32 %v2922_v14, %v2485_v13 }
 0x524   :  { %v2942_v18 = vpop.f32.mrb[12].mxu1 }
 0x525   :  { %v2943_v23 = vpop.f32.mrb[13].mxu1 }
 0x526   :  { %v2944_v19 = vadd.f32 %v2943_v23, %v2942_v18  ;;  %v2945_v24 = vpop.f32.mrb[14].mxu1 }
 0x527   :  { %v2946_v28 = vpop.f32.mrb[15].mxu1 }
 0x528   :  { %v2565_v29 = vadd.f32 %v2944_v19, %v2525_v16 }
 0x52a   :  { %v2570_v30 = vmul.f32 0.5, %v2565_v29 }
 0x52c   :  { %3408 = vtanh.f32 %v2570_v30 }
 0x536   :  { %v3409_v31 = vpop.eup %3408 }
 0x537   :  { %v2572_v32 = vmul.f32 0.5, %v3409_v31 }
 0x539   :  { %v2573_v33 = vadd.f32 0.5, %v2572_v32 }
 0x53b   :  { %2574 = vst [vmem:[#allocation13] sm:$0xff] %v2573_v33 }
 0x53c   :  { %3553 = shalt.err (!%p3550_p10)
}
 0x53d   :  { %s3554_s22 = scalar_lea.hbm %s3787_s6, 128 }
 0x53e   :  { %p3555_p11 = scmp.ne.s32.totalorder %s3787_s6, %s3554_s22  ;;  %p3558_p12 = scmp.lt.u32.totalorder %s3554_s22, %s3787_s6 }
 0x540   :  { %p3560_p13 = pnand %p3558_p12, %p3555_p11 }
 0x542   :  { %3563 = shalt.err (!%p3560_p13)
}
 0x543   :  { %2584 = dma.vmem_to_hbm [thread:$0]  %s2582_s14, 128, %s3787_s6, [#allocation4]  }
 0x544   :  { %3572 = dma.done.wait [#allocation4], 128  }
 0x545   :  { %3573 = vsyncadd [#allocation4], 4294967168 }
 0x546   :  { %2588 = vsyncpa [#allocation3], 1 }
 0x547   :  { %2589 = vsyncpa [#allocation6], 1 }
 0x548   :  { %2590 = vsyncpa [#allocation9], 1 }
 0x549   :  { %2591 = vsyncpa [#allocation12], 1 }
 0x54a   :  { %2592 = vsyncpa [#allocation4], 1 }

</bundles_post_ra>
